<compile_context>
chip_gen: v7x
topology: tpu7x:2x2x1
jax: 0.10.0
libtpu: 0.0.40
codegen_flags: <defaults>
</compile_context>

<pallas_src>
import math
from functools import partial

import numpy as np
import jax
import jax.numpy as jnp
from jax.experimental import pallas as pl
from jax.experimental.pallas import tpu as pltpu

LN_EPS = 1e-5                       # nn.LayerNorm default
VMEM_LIMIT = 48 * 1024 * 1024       # explicit scoped-VMEM budget


def _largest_divisor_leq(n, cap):
    cap = max(1, min(n, cap))
    for d in range(cap, 0, -1):
        if n % d == 0:
            return d
    return 1


# -------------------------- glue (reshape-only) -----------------------------
def window_partition_jax(x, ws):
    B, H, W, C = x.shape
    x = x.reshape(B, H // ws, ws, W // ws, ws, C)
    return x.transpose(0, 1, 3, 2, 4, 5).reshape(-1, ws, ws, C)


def window_reverse_jax(windows, ws, H, W):
    B = windows.shape[0] // (H * W // ws // ws)
    x = windows.reshape(B, H // ws, W // ws, ws, ws, -1)
    return x.transpose(0, 1, 3, 2, 4, 5).reshape(B, H, W, -1)


# ------------------------------ kernel 1: LN ---------------------------------
def _ln_kernel(x_ref, g_ref, b_ref, o_ref):
    x = x_ref[...].astype(jnp.float32)
    mu = jnp.mean(x, axis=-1, keepdims=True)
    var = jnp.mean((x - mu) ** 2, axis=-1, keepdims=True)
    y = (x - mu) * jax.lax.rsqrt(var + LN_EPS)
    o_ref[...] = (y * g_ref[...] + b_ref[...]).astype(o_ref.dtype)


def layernorm_pallas(x2d, gamma, beta, tile_rows=512):
    R, C = x2d.shape
    tile_rows = _largest_divisor_leq(R, tile_rows)
    return pl.pallas_call(
        _ln_kernel,
        out_shape=jax.ShapeDtypeStruct((R, C), x2d.dtype),
        grid=(R // tile_rows,),
        in_specs=[
            pl.BlockSpec((tile_rows, C), lambda i: (i, 0)),
            pl.BlockSpec((1, C), lambda i: (0, 0)),
            pl.BlockSpec((1, C), lambda i: (0, 0)),
        ],
        out_specs=pl.BlockSpec((tile_rows, C), lambda i: (i, 0)),
        compiler_params=pltpu.CompilerParams(dimension_semantics=("parallel",)),
    )(x2d, gamma.reshape(1, C), beta.reshape(1, C))


# ------------------------ kernel 2: window attention -------------------------
def _window_attn_kernel(*refs, num_heads, has_mask, apply_ln, approx_recip):
    it = iter(refs)
    x_ref = next(it)            # (TILE_W*N, C)
    wqkv_t_ref = next(it)       # (C, 3C)   compute dtype (q rows pre-scaled)
    bqkv_ref = next(it)         # (1, 3C)   f32          (q part pre-scaled)
    relb_ref = next(it)         # (nH, N, N) f32
    wproj_t_ref = next(it)      # (C, C)    compute dtype
    bproj_ref = next(it)        # (1, C)    f32
    mask_ref = next(it) if has_mask else None     # (TILE_W, N, N) f32
    g1_ref = next(it) if apply_ln else None       # (1, C) f32
    b1_ref = next(it) if apply_ln else None       # (1, C) f32
    o_ref = next(it)            # (TILE_W*N, C)

    R, C = x_ref.shape
    N = relb_ref.shape[1]
    T = R // N
    hd = C // num_heads
    cdt = wqkv_t_ref.dtype

    x = x_ref[...].astype(jnp.float32)
    if apply_ln:                                  # fused LayerNorm (norm1)
        mu = jnp.mean(x, axis=-1, keepdims=True)
        var = jnp.mean((x - mu) ** 2, axis=-1, keepdims=True)
        x = (x - mu) * jax.lax.rsqrt(var + LN_EPS)
        x = x * g1_ref[...].astype(jnp.float32) + b1_ref[...].astype(jnp.float32)

    # One big row-batched QKV projection for all TILE_W windows.
    qkv = jnp.dot(x.astype(cdt), wqkv_t_ref[...],
                  preferred_element_type=jnp.float32)
    qkv = qkv + bqkv_ref[...].astype(jnp.float32)            # (R, 3C)
    qkv3 = qkv.reshape(T, N, 3 * C)

    if has_mask:
        mask = mask_ref[...].astype(jnp.float32)              # (T, N, N)

    outs = []
    for h in range(num_heads):                    # static unroll over heads
        q = qkv3[:, :, h * hd:(h + 1) * hd]                   # already scaled
        k = qkv3[:, :, C + h * hd: C + (h + 1) * hd]
        v = qkv3[:, :, 2 * C + h * hd: 2 * C + (h + 1) * hd]
        a = jnp.einsum("wnd,wmd->wnm", q.astype(cdt), k.astype(cdt),
                       preferred_element_type=jnp.float32)    # (T, N, N)
        a = a + relb_ref[h].astype(jnp.float32)
        if has_mask:
            a = a + mask
        a = a - jnp.max(a, axis=-1, keepdims=True)
        p = jnp.exp(a)
        p = p * pl.reciprocal(jnp.sum(p, axis=-1, keepdims=True),
                              approx=approx_recip)
        outs.append(jnp.einsum("wnm,wmd->wnd", p.astype(cdt), v.astype(cdt),
                               preferred_element_type=jnp.float32))
    out = jnp.concatenate(outs, axis=-1).reshape(R, C)

    # Row-batched output projection; lane-dense 2D store.
    o = jnp.dot(out.astype(cdt), wproj_t_ref[...],
                preferred_element_type=jnp.float32)
    o = o + bproj_ref[...].astype(jnp.float32)
    o_ref[...] = o.astype(o_ref.dtype)


def window_attention_pallas(x_flat, mask, rel_bias, wqkv, bqkv, wproj, bproj,
                            num_heads, scale, g1=None, b1=None,
                            compute_dtype=jnp.bfloat16, row_cap=1024):
    """x_flat: (nWB*N, C) slab; mask: (nW, N, N) or None; returns (nWB*N, C)."""
    RT, C = x_flat.shape
    nH, N, _ = rel_bias.shape
    nWB = RT // N
    has_mask = mask is not None
    apply_ln = g1 is not None
    approx_recip = (compute_dtype == jnp.bfloat16)

    # Fold the qk scale into the Q rows of the QKV projection (torch layout is
    # (3C, C) with rows [q | k | v]); removes a per-step (R, C) multiply.
    wqkv_eff = wqkv.at[:C].multiply(scale)
    bqkv_eff = bqkv.at[:C].multiply(scale)

    # TILE_W windows per grid step; must divide nW when masked so the mask
    # block for a step is a contiguous chunk of the (nW, N, N) mask.
    group = mask.shape[0] if has_mask else nWB
    tile_w = _largest_divisor_leq(group, max(1, row_cap // N))
    rows = tile_w * N
    grid = (nWB // tile_w,)

    kernel = partial(_window_attn_kernel, num_heads=num_heads,
                     has_mask=has_mask, apply_ln=apply_ln,
                     approx_recip=approx_recip)

    in_specs = [
        pl.BlockSpec((rows, C), lambda b: (b, 0)),             # x windows
        pl.BlockSpec((C, 3 * C), lambda b: (0, 0)),            # Wqkv^T
        pl.BlockSpec((1, 3 * C), lambda b: (0, 0)),            # bqkv
        pl.BlockSpec((nH, N, N), lambda b: (0, 0, 0)),         # rel bias
        pl.BlockSpec((C, C), lambda b: (0, 0)),                # Wproj^T
        pl.BlockSpec((1, C), lambda b: (0, 0)),                # bproj
    ]
    args = [x_flat,
            wqkv_eff.T.astype(compute_dtype),
            bqkv_eff.reshape(1, 3 * C).astype(jnp.float32),
            rel_bias.astype(jnp.float32),
            wproj.T.astype(compute_dtype),
            bproj.reshape(1, C).astype(jnp.float32)]

    if has_mask:
        nW = mask.shape[0]
        n_blk = nW // tile_w
        in_specs.append(pl.BlockSpec((tile_w, N, N),
                                     lambda b: (b % n_blk, 0, 0)))
        args.append(mask.astype(jnp.float32))
    if apply_ln:
        in_specs += [pl.BlockSpec((1, C), lambda b: (0, 0)),
                     pl.BlockSpec((1, C), lambda b: (0, 0))]
        args += [g1.reshape(1, C).astype(jnp.float32),
                 b1.reshape(1, C).astype(jnp.float32)]

    return pl.pallas_call(
        kernel,
        out_shape=jax.ShapeDtypeStruct((RT, C), x_flat.dtype),
        grid=grid,
        in_specs=in_specs,
        out_specs=pl.BlockSpec((rows, C), lambda b: (b, 0)),
        compiler_params=pltpu.CompilerParams(
            dimension_semantics=("parallel",),      # windows independent (v7x)
            vmem_limit_bytes=VMEM_LIMIT),
    )(*args)


# -------------- kernel 3: residual + LN2 + MLP(GELU) + residual --------------
def _mlp_res_kernel(short_ref, attn_ref, g2_ref, b2_ref, w1_t_ref, bb1_ref,
                    w2_t_ref, bb2_ref, o_ref):
    cdt = w1_t_ref.dtype
    h = short_ref[...].astype(jnp.float32) + attn_ref[...].astype(jnp.float32)
    mu = jnp.mean(h, axis=-1, keepdims=True)
    var = jnp.mean((h - mu) ** 2, axis=-1, keepdims=True)
    y = (h - mu) * jax.lax.rsqrt(var + LN_EPS)
    y = y * g2_ref[...].astype(jnp.float32) + b2_ref[...].astype(jnp.float32)
    z = jnp.dot(y.astype(cdt), w1_t_ref[...], preferred_element_type=jnp.float32)
    z = z + bb1_ref[...].astype(jnp.float32)
    z = 0.5 * z * (1.0 + jax.lax.erf(z * (1.0 / math.sqrt(2.0))))  # exact GELU
    o = h + jnp.dot(z.astype(cdt), w2_t_ref[...],
                    preferred_element_type=jnp.float32)
    o = o + bb2_ref[...].astype(jnp.float32)
    o_ref[...] = o.astype(o_ref.dtype)


def mlp_res_pallas(shortcut, attn_out, g2, b2, w1, bb1, w2, bb2,
                   tile_rows=512, compute_dtype=jnp.bfloat16):
    R, C = shortcut.shape
    Hd = w1.shape[0]
    tile_rows = _largest_divisor_leq(R, tile_rows)
    return pl.pallas_call(
        _mlp_res_kernel,
        out_shape=jax.ShapeDtypeStruct((R, C), shortcut.dtype),
        grid=(R // tile_rows,),
        in_specs=[
            pl.BlockSpec((tile_rows, C), lambda i: (i, 0)),
            pl.BlockSpec((tile_rows, C), lambda i: (i, 0)),
            pl.BlockSpec((1, C), lambda i: (0, 0)),
            pl.BlockSpec((1, C), lambda i: (0, 0)),
            pl.BlockSpec((C, Hd), lambda i: (0, 0)),
            pl.BlockSpec((1, Hd), lambda i: (0, 0)),
            pl.BlockSpec((Hd, C), lambda i: (0, 0)),
            pl.BlockSpec((1, C), lambda i: (0, 0)),
        ],
        out_specs=pl.BlockSpec((tile_rows, C), lambda i: (i, 0)),
        compiler_params=pltpu.CompilerParams(
            dimension_semantics=("parallel",),
            vmem_limit_bytes=VMEM_LIMIT),
    )(shortcut, attn_out, g2.reshape(1, C).astype(jnp.float32),
      b2.reshape(1, C).astype(jnp.float32),
      w1.T.astype(compute_dtype), bb1.reshape(1, Hd).astype(jnp.float32),
      w2.T.astype(compute_dtype), bb2.reshape(1, C).astype(jnp.float32))


# ----------------------------- full block forward ----------------------------
def swin_block_forward(x, mask_matrix, p, H, W, window_size, shift_size,
                       num_heads, compute_dtype=jnp.bfloat16):
    B, L, C = x.shape
    assert L == H * W
    ws = window_size
    shortcut2d = x.reshape(B * L, C)

    pad_r = (ws - W % ws) % ws
    pad_b = (ws - H % ws) % ws
    # LN1 commutes with roll / window-partition (row permutations), so it can
    # be fused into the attention kernel whenever no zero-padding is inserted.
    fuse_ln1 = (pad_r == 0 and pad_b == 0)

    if fuse_ln1:
        xv = x.reshape(B, H, W, C)
    else:
        xn = layernorm_pallas(x.reshape(B * L, C), p["g1"], p["b1"])
        xv = xn.reshape(B, H, W, C)
        xv = jnp.pad(xv, ((0, 0), (0, pad_b), (0, pad_r), (0, 0)))
    Hp, Wp = H + pad_b, W + pad_r

    if shift_size > 0:
        shifted = jnp.roll(xv, shift=(-shift_size, -shift_size), axis=(1, 2))
        attn_mask = mask_matrix
    else:
        shifted = xv
        attn_mask = None            # mask path compiled out entirely

    x_windows = window_partition_jax(shifted, ws).reshape(-1, C)   # (nWB*N, C)
    scale = (C // num_heads) ** (-0.5)
    attn_flat = window_attention_pallas(
        x_windows, attn_mask, p["rel_bias"], p["wqkv"], p["bqkv"],
        p["wproj"], p["bproj"], num_heads, scale,
        g1=p["g1"] if fuse_ln1 else None,
        b1=p["b1"] if fuse_ln1 else None,
        compute_dtype=compute_dtype)

    attn_windows = attn_flat.reshape(-1, ws, ws, C)
    shifted = window_reverse_jax(attn_windows, ws, Hp, Wp)
    if shift_size > 0:
        xo = jnp.roll(shifted, shift=(shift_size, shift_size), axis=(1, 2))
    else:
        xo = shifted
    if pad_r > 0 or pad_b > 0:
        xo = xo[:, :H, :W, :]
    attn_out = xo.reshape(B * L, C)

    out = mlp_res_pallas(shortcut2d, attn_out, p["g2"], p["b2"],
                         p["w1"], p["bb1"], p["w2"], p["bb2"],
                         compute_dtype=compute_dtype)
    return out.reshape(B, L, C)


# ------------------------------ pure-JAX reference ---------------------------
def ref_forward(x, mask_matrix, p, H, W, ws, shift, nH):
    B, L, C = x.shape
    d = C // nH
    scale = d ** (-0.5)
    shortcut = x

    mu = x.mean(-1, keepdims=True)
    var = ((x - mu) ** 2).mean(-1, keepdims=True)
    xn = (x - mu) / jnp.sqrt(var + LN_EPS) * p["g1"] + p["b1"]
    xv = xn.reshape(B, H, W, C)

    pad_r = (ws - W % ws) % ws
    pad_b = (ws - H % ws) % ws
    xv = jnp.pad(xv, ((0, 0), (0, pad_b), (0, pad_r), (0, 0)))
    Hp, Wp = H + pad_b, W + pad_r
    shifted = jnp.roll(xv, (-shift, -shift), (1, 2)) if shift > 0 else xv

    xw = window_partition_jax(shifted, ws).reshape(-1, ws * ws, C)
    nWB, N, _ = xw.shape
    qkv = xw @ p["wqkv"].T + p["bqkv"]
    qkv = qkv.reshape(nWB, N, 3, nH, d).transpose(2, 0, 3, 1, 4)
    q, k, v = qkv[0] * scale, qkv[1], qkv[2]
    attn = jnp.einsum("bhnd,bhmd->bhnm", q, k)
    attn = attn + p["rel_bias"][None]
    if shift > 0:
        nW = mask_matrix.shape[0]
        attn = attn.reshape(nWB // nW, nW, nH, N, N) + mask_matrix[None, :, None]
        attn = attn.reshape(nWB, nH, N, N)
    attn = jax.nn.softmax(attn, axis=-1)
    out = jnp.einsum("bhnm,bhmd->bhnd", attn, v)
    out = out.transpose(0, 2, 1, 3).reshape(nWB, N, C)
    out = out @ p["wproj"].T + p["bproj"]

    out = out.reshape(-1, ws, ws, C)
    shifted = window_reverse_jax(out, ws, Hp, Wp)
    xo = jnp.roll(shifted, (shift, shift), (1, 2)) if shift > 0 else shifted
    xo = xo[:, :H, :W, :].reshape(B, L, C)

    h = shortcut + xo
    mu = h.mean(-1, keepdims=True)
    var = ((h - mu) ** 2).mean(-1, keepdims=True)
    y = (h - mu) / jnp.sqrt(var + LN_EPS) * p["g2"] + p["b2"]
    z = y @ p["w1"].T + p["bb1"]
    z = 0.5 * z * (1.0 + jax.lax.erf(z / math.sqrt(2.0)))
    return h + z @ p["w2"].T + p["bb2"]


# ----------------------------------- helpers ---------------------------------
def build_attn_mask(H, W, ws, shift):
    """Same construction as Swin BasicLayer (for the padded spatial size)."""
    Hp = int(np.ceil(H / ws)) * ws
    Wp = int(np.ceil(W / ws)) * ws
    img_mask = np.zeros((1, Hp, Wp, 1), np.float32)
    cnt = 0
    for hs in (slice(0, -ws), slice(-ws, -shift), slice(-shift, None)):
        for wsl in (slice(0, -ws), slice(-ws, -shift), slice(-shift, None)):
            img_mask[:, hs, wsl, :] = cnt
            cnt += 1
    mw = np.asarray(window_partition_jax(jnp.asarray(img_mask), ws))
    mw = mw.reshape(-1, ws * ws)
    diff = mw[:, None, :] - mw[:, :, None]
    return jnp.asarray(np.where(diff != 0, -100.0, 0.0).astype(np.float32))


# ----------------------------------- main ------------------------------------
if __name__ == "__main__":
    B = 2
    dim, num_heads = 32, 2
    window_size = 4
    mlp_ratio = 4.0
    ws = window_size
    N = ws * ws
    hidden = int(dim * mlp_ratio)

    key = jax.random.PRNGKey(0)
    ks = jax.random.split(key, 16)

    def nrm(k, shape, s=0.02):
        return jax.random.normal(k, shape, jnp.float32) * s

    # relative position bias (table -> (nH, N, N)), same index math as torch
    coords = np.stack(np.meshgrid(np.arange(ws), np.arange(ws), indexing="ij"))
    coords_flat = coords.reshape(2, -1)
    rel = coords_flat[:, :, None] - coords_flat[:, None, :]
    rel = rel.transpose(1, 2, 0).astype(np.int64)
    rel[:, :, 0] += ws - 1
    rel[:, :, 1] += ws - 1
    rel[:, :, 0] *= 2 * ws - 1
    rel_index = rel.sum(-1)                                   # (N, N)
    table = nrm(ks[0], ((2 * ws - 1) * (2 * ws - 1), num_heads))
    rel_bias = table[jnp.asarray(rel_index.reshape(-1))]
    rel_bias = rel_bias.reshape(N, N, num_heads).transpose(2, 0, 1)  # (nH,N,N)

    params = {
        "g1": 1.0 + nrm(ks[1], (dim,), 0.05),
        "b1": nrm(ks[2], (dim,)),
        "wqkv": nrm(ks[3], (3 * dim, dim)),
        "bqkv": nrm(ks[4], (3 * dim,)),
        "rel_bias": rel_bias,
        "wproj": nrm(ks[5], (dim, dim)),
        "bproj": nrm(ks[6], (dim,)),
        "g2": 1.0 + nrm(ks[7], (dim,), 0.05),
        "b2": nrm(ks[8], (dim,)),
        "w1": nrm(ks[9], (hidden, dim)),
        "bb1": nrm(ks[10], (hidden,)),
        "w2": nrm(ks[11], (dim, hidden)),
        "bb2": nrm(ks[12], (dim,)),
    }

    # (H, W, shift): shifted/masked, non-shifted/unmasked, and padded+shifted
    configs = [(8, 8, 2), (8, 8, 0), (10, 10, 2)]
    xkeys = jax.random.split(ks[13], len(configs))

    out = None
    for ci, (H, W, shift) in enumerate(configs):
        L = H * W
        x = jax.random.normal(xkeys[ci], (B, L, dim), jnp.float32)
        mask_matrix = build_attn_mask(H, W, ws, shift) if shift > 0 else None

        ref = jax.block_until_ready(
            ref_forward(x, mask_matrix, params, H, W, ws, shift, num_heads))

        # f32 matmul path (tight tolerance vs. the exact reference)
        out_f32 = jax.block_until_ready(
            swin_block_forward(x, mask_matrix, params, H, W, ws, shift,
                               num_heads, compute_dtype=jnp.float32))
        np.testing.assert_allclose(np.asarray(out_f32), np.asarray(ref),
                                   rtol=3e-4, atol=3e-4)

        # bf16 matmul path (MXU fast path; looser tolerance)
        out = jax.block_until_ready(
            swin_block_forward(x, mask_matrix, params, H, W, ws, shift,
                               num_heads, compute_dtype=jnp.bfloat16))
        np.testing.assert_allclose(np.asarray(out), np.asarray(ref),
                                   rtol=2e-2, atol=2e-2)

    print("KERNEL_OK")
</pallas_src>

<mosaic_0001>
module attributes {stable_mosaic.version = 11 : i64} {
  func.func @_window_attn_kernel(%arg0: i32, %arg1: memref<64x32xf32, #tpu.memory_space<vmem>>, %arg2: memref<32x96xf32, #tpu.memory_space<vmem>>, %arg3: memref<1x96xf32, #tpu.memory_space<vmem>>, %arg4: memref<2x16x16xf32, #tpu.memory_space<vmem>>, %arg5: memref<32x32xf32, #tpu.memory_space<vmem>>, %arg6: memref<1x32xf32, #tpu.memory_space<vmem>>, %arg7: memref<4x16x16xf32, #tpu.memory_space<vmem>>, %arg8: memref<1x32xf32, #tpu.memory_space<vmem>>, %arg9: memref<1x32xf32, #tpu.memory_space<vmem>>, %arg10: memref<64x32xf32, #tpu.memory_space<vmem>>) attributes {dimension_semantics = [#tpu.dimension_semantics<parallel>], iteration_bounds = array<i64: 2>, scalar_prefetch = 0 : i64, scratch_operands = 0 : i64, tpu.core_type = #tpu.core_type<tc>, window_params = [{transform_indices = @transform_0, window_bounds = array<i64: 64, 32>}, {pipeline_mode = #tpu.pipeline_mode<synchronous>, transform_indices = @transform_1, window_bounds = array<i64: 32, 96>}, {pipeline_mode = #tpu.pipeline_mode<synchronous>, transform_indices = @transform_2, window_bounds = array<i64: 1, 96>}, {pipeline_mode = #tpu.pipeline_mode<synchronous>, transform_indices = @transform_3, window_bounds = array<i64: 2, 16, 16>}, {pipeline_mode = #tpu.pipeline_mode<synchronous>, transform_indices = @transform_4, window_bounds = array<i64: 32, 32>}, {pipeline_mode = #tpu.pipeline_mode<synchronous>, transform_indices = @transform_5, window_bounds = array<i64: 1, 32>}, {transform_indices = @transform_6, window_bounds = array<i64: 4, 16, 16>}, {pipeline_mode = #tpu.pipeline_mode<synchronous>, transform_indices = @transform_7, window_bounds = array<i64: 1, 32>}, {pipeline_mode = #tpu.pipeline_mode<synchronous>, transform_indices = @transform_8, window_bounds = array<i64: 1, 32>}, {transform_indices = @transform_9, window_bounds = array<i64: 64, 32>}]} {
    %c0 = arith.constant 0 : index
    %c0_0 = arith.constant 0 : index
    %0 = vector.load %arg1[%c0, %c0_0] : memref<64x32xf32, #tpu.memory_space<vmem>>, vector<64x32xf32>
    %cst = arith.constant dense<0.000000e+00> : vector<64xf32>
    %1 = vector.multi_reduction <add>, %0, %cst [1] : vector<64x32xf32> to vector<64xf32>
    %2 = vector.shape_cast %1 : vector<64xf32> to vector<64x1xf32>
    %cst_1 = arith.constant 3.200000e+01 : f32
    %3 = vector.broadcast %cst_1 : f32 to vector<64x1xf32>
    %4 = arith.divf %2, %3 : vector<64x1xf32>
    %5 = vector.broadcast %4 : vector<64x1xf32> to vector<64x32xf32>
    %6 = arith.subf %0, %5 : vector<64x32xf32>
    %7 = arith.mulf %6, %6 : vector<64x32xf32>
    %cst_2 = arith.constant dense<0.000000e+00> : vector<64xf32>
    %8 = vector.multi_reduction <add>, %7, %cst_2 [1] : vector<64x32xf32> to vector<64xf32>
    %9 = vector.shape_cast %8 : vector<64xf32> to vector<64x1xf32>
    %cst_3 = arith.constant 3.200000e+01 : f32
    %10 = vector.broadcast %cst_3 : f32 to vector<64x1xf32>
    %11 = arith.divf %9, %10 : vector<64x1xf32>
    %12 = vector.broadcast %4 : vector<64x1xf32> to vector<64x32xf32>
    %13 = arith.subf %0, %12 : vector<64x32xf32>
    %cst_4 = arith.constant 9.99999974E-6 : f32
    %14 = vector.broadcast %cst_4 : f32 to vector<64x1xf32>
    %15 = arith.addf %11, %14 : vector<64x1xf32>
    %16 = math.rsqrt %15 : vector<64x1xf32>
    %17 = vector.broadcast %16 : vector<64x1xf32> to vector<64x32xf32>
    %18 = arith.mulf %13, %17 : vector<64x32xf32>
    %c0_5 = arith.constant 0 : index
    %c0_6 = arith.constant 0 : index
    %19 = vector.load %arg8[%c0_5, %c0_6] : memref<1x32xf32, #tpu.memory_space<vmem>>, vector<1x32xf32>
    %20 = vector.broadcast %19 : vector<1x32xf32> to vector<64x32xf32>
    %21 = arith.mulf %18, %20 : vector<64x32xf32>
    %c0_7 = arith.constant 0 : index
    %c0_8 = arith.constant 0 : index
    %22 = vector.load %arg9[%c0_7, %c0_8] : memref<1x32xf32, #tpu.memory_space<vmem>>, vector<1x32xf32>
    %23 = vector.broadcast %22 : vector<1x32xf32> to vector<64x32xf32>
    %24 = arith.addf %21, %23 : vector<64x32xf32>
    %c0_9 = arith.constant 0 : index
    %c0_10 = arith.constant 0 : index
    %25 = vector.load %arg2[%c0_9, %c0_10] : memref<32x96xf32, #tpu.memory_space<vmem>>, vector<32x96xf32>
    %cst_11 = arith.constant dense<0.000000e+00> : vector<64x96xf32>
    %26 = tpu.matmul %24, %25, %cst_11 {dimension_numbers = #tpu.dot_dimension_numbers<[1], [0], [0], [1], [0, 0, 1, 1], [], []>} : vector<64x32xf32>, vector<32x96xf32>, vector<64x96xf32> -> vector<64x96xf32>
    %c0_12 = arith.constant 0 : index
    %c0_13 = arith.constant 0 : index
    %27 = vector.load %arg3[%c0_12, %c0_13] : memref<1x96xf32, #tpu.memory_space<vmem>>, vector<1x96xf32>
    %28 = vector.broadcast %27 : vector<1x96xf32> to vector<64x96xf32>
    %29 = arith.addf %26, %28 : vector<64x96xf32>
    %30 = vector.shape_cast %29 : vector<64x96xf32> to vector<4x16x96xf32>
    %c0_14 = arith.constant 0 : index
    %c0_15 = arith.constant 0 : index
    %c0_16 = arith.constant 0 : index
    %31 = vector.load %arg7[%c0_14, %c0_15, %c0_16] : memref<4x16x16xf32, #tpu.memory_space<vmem>>, vector<4x16x16xf32>
    %32 = vector.extract_strided_slice %30 {offsets = [0, 0, 0], sizes = [4, 16, 16], strides = [1, 1, 1]} : vector<4x16x96xf32> to vector<4x16x16xf32>
    %33 = vector.extract_strided_slice %30 {offsets = [0, 0, 32], sizes = [4, 16, 16], strides = [1, 1, 1]} : vector<4x16x96xf32> to vector<4x16x16xf32>
    %34 = vector.extract_strided_slice %30 {offsets = [0, 0, 64], sizes = [4, 16, 16], strides = [1, 1, 1]} : vector<4x16x96xf32> to vector<4x16x16xf32>
    "tpu.trace_start"() <{level = 10 : i32, message = "wnd,wmd->wnm"}> : () -> ()
    %cst_17 = arith.constant dense<0.000000e+00> : vector<4x16x16xf32>
    %35 = tpu.matmul %32, %33, %cst_17 {dimension_numbers = #tpu.dot_dimension_numbers<[2], [2], [1], [1], [0, 0, 0, 1, 1, 1], [0], [0]>} : vector<4x16x16xf32>, vector<4x16x16xf32>, vector<4x16x16xf32> -> vector<4x16x16xf32>
    "tpu.trace_stop"() : () -> ()
    %c0_18 = arith.constant 0 : index
    %c0_19 = arith.constant 0 : index
    %c0_20 = arith.constant 0 : index
    %36 = vector.load %arg4[%c0_18, %c0_19, %c0_20] : memref<2x16x16xf32, #tpu.memory_space<vmem>>, vector<1x16x16xf32>
    %37 = vector.shape_cast %36 : vector<1x16x16xf32> to vector<16x16xf32>
    %38 = vector.shape_cast %37 : vector<16x16xf32> to vector<1x16x16xf32>
    %39 = vector.broadcast %38 : vector<1x16x16xf32> to vector<4x16x16xf32>
    %40 = arith.addf %35, %39 : vector<4x16x16xf32>
    %41 = arith.addf %40, %31 : vector<4x16x16xf32>
    %cst_21 = arith.constant dense<0xFF800000> : vector<4x16xf32>
    %42 = vector.multi_reduction <maximumf>, %41, %cst_21 [2] : vector<4x16x16xf32> to vector<4x16xf32>
    %43 = vector.shape_cast %42 : vector<4x16xf32> to vector<4x16x1xf32>
    %44 = vector.broadcast %43 : vector<4x16x1xf32> to vector<4x16x16xf32>
    %45 = arith.subf %41, %44 : vector<4x16x16xf32>
    %46 = math.exp %45 : vector<4x16x16xf32>
    %cst_22 = arith.constant dense<0.000000e+00> : vector<4x16xf32>
    %47 = vector.multi_reduction <add>, %46, %cst_22 [2] : vector<4x16x16xf32> to vector<4x16xf32>
    %48 = vector.shape_cast %47 : vector<4x16xf32> to vector<4x16x1xf32>
    %49 = tpu.reciprocal %48 : vector<4x16x1xf32> -> vector<4x16x1xf32>
    %50 = vector.broadcast %49 : vector<4x16x1xf32> to vector<4x16x16xf32>
    %51 = arith.mulf %46, %50 : vector<4x16x16xf32>
    "tpu.trace_start"() <{level = 10 : i32, message = "wnm,wmd->wnd"}> : () -> ()
    %cst_23 = arith.constant dense<0.000000e+00> : vector<4x16x16xf32>
    %52 = tpu.matmul %51, %34, %cst_23 {dimension_numbers = #tpu.dot_dimension_numbers<[2], [1], [1], [2], [0, 0, 0, 1, 1, 2], [0], [0]>} : vector<4x16x16xf32>, vector<4x16x16xf32>, vector<4x16x16xf32> -> vector<4x16x16xf32>
    "tpu.trace_stop"() : () -> ()
    %53 = vector.extract_strided_slice %30 {offsets = [0, 0, 16], sizes = [4, 16, 16], strides = [1, 1, 1]} : vector<4x16x96xf32> to vector<4x16x16xf32>
    %54 = vector.extract_strided_slice %30 {offsets = [0, 0, 48], sizes = [4, 16, 16], strides = [1, 1, 1]} : vector<4x16x96xf32> to vector<4x16x16xf32>
    %55 = vector.extract_strided_slice %30 {offsets = [0, 0, 80], sizes = [4, 16, 16], strides = [1, 1, 1]} : vector<4x16x96xf32> to vector<4x16x16xf32>
    "tpu.trace_start"() <{level = 10 : i32, message = "wnd,wmd->wnm"}> : () -> ()
    %cst_24 = arith.constant dense<0.000000e+00> : vector<4x16x16xf32>
    %56 = tpu.matmul %53, %54, %cst_24 {dimension_numbers = #tpu.dot_dimension_numbers<[2], [2], [1], [1], [0, 0, 0, 1, 1, 1], [0], [0]>} : vector<4x16x16xf32>, vector<4x16x16xf32>, vector<4x16x16xf32> -> vector<4x16x16xf32>
    "tpu.trace_stop"() : () -> ()
    %c1 = arith.constant 1 : index
    %c0_25 = arith.constant 0 : index
    %c0_26 = arith.constant 0 : index
    %57 = vector.load %arg4[%c1, %c0_25, %c0_26] : memref<2x16x16xf32, #tpu.memory_space<vmem>>, vector<1x16x16xf32>
    %58 = vector.shape_cast %57 : vector<1x16x16xf32> to vector<16x16xf32>
    %59 = vector.shape_cast %58 : vector<16x16xf32> to vector<1x16x16xf32>
    %60 = vector.broadcast %59 : vector<1x16x16xf32> to vector<4x16x16xf32>
    %61 = arith.addf %56, %60 : vector<4x16x16xf32>
    %62 = arith.addf %61, %31 : vector<4x16x16xf32>
    %cst_27 = arith.constant dense<0xFF800000> : vector<4x16xf32>
    %63 = vector.multi_reduction <maximumf>, %62, %cst_27 [2] : vector<4x16x16xf32> to vector<4x16xf32>
    %64 = vector.shape_cast %63 : vector<4x16xf32> to vector<4x16x1xf32>
    %65 = vector.broadcast %64 : vector<4x16x1xf32> to vector<4x16x16xf32>
    %66 = arith.subf %62, %65 : vector<4x16x16xf32>
    %67 = math.exp %66 : vector<4x16x16xf32>
    %cst_28 = arith.constant dense<0.000000e+00> : vector<4x16xf32>
    %68 = vector.multi_reduction <add>, %67, %cst_28 [2] : vector<4x16x16xf32> to vector<4x16xf32>
    %69 = vector.shape_cast %68 : vector<4x16xf32> to vector<4x16x1xf32>
    %70 = tpu.reciprocal %69 : vector<4x16x1xf32> -> vector<4x16x1xf32>
    %71 = vector.broadcast %70 : vector<4x16x1xf32> to vector<4x16x16xf32>
    %72 = arith.mulf %67, %71 : vector<4x16x16xf32>
    "tpu.trace_start"() <{level = 10 : i32, message = "wnm,wmd->wnd"}> : () -> ()
    %cst_29 = arith.constant dense<0.000000e+00> : vector<4x16x16xf32>
    %73 = tpu.matmul %72, %55, %cst_29 {dimension_numbers = #tpu.dot_dimension_numbers<[2], [1], [1], [2], [0, 0, 0, 1, 1, 2], [0], [0]>} : vector<4x16x16xf32>, vector<4x16x16xf32>, vector<4x16x16xf32> -> vector<4x16x16xf32>
    "tpu.trace_stop"() : () -> ()
    %74 = tpu.concatenate %52, %73 in 2 : vector<4x16x16xf32>, vector<4x16x16xf32> -> vector<4x16x32xf32>
    %75 = vector.shape_cast %74 : vector<4x16x32xf32> to vector<64x32xf32>
    %c0_30 = arith.constant 0 : index
    %c0_31 = arith.constant 0 : index
    %76 = vector.load %arg5[%c0_30, %c0_31] : memref<32x32xf32, #tpu.memory_space<vmem>>, vector<32x32xf32>
    %cst_32 = arith.constant dense<0.000000e+00> : vector<64x32xf32>
    %77 = tpu.matmul %75, %76, %cst_32 {dimension_numbers = #tpu.dot_dimension_numbers<[1], [0], [0], [1], [0, 0, 1, 1], [], []>} : vector<64x32xf32>, vector<32x32xf32>, vector<64x32xf32> -> vector<64x32xf32>
    %c0_33 = arith.constant 0 : index
    %c0_34 = arith.constant 0 : index
    %78 = vector.load %arg6[%c0_33, %c0_34] : memref<1x32xf32, #tpu.memory_space<vmem>>, vector<1x32xf32>
    %79 = vector.broadcast %78 : vector<1x32xf32> to vector<64x32xf32>
    %80 = arith.addf %77, %79 : vector<64x32xf32>
    %c0_35 = arith.constant 0 : index
    %c0_36 = arith.constant 0 : index
    %81 = vector.load %arg10[%c0_35, %c0_36] : memref<64x32xf32, #tpu.memory_space<vmem>>, vector<64x32xf32>
    tpu.vector_store %arg10[%c0_35, %c0_36], %80 {strides = array<i32>} : memref<64x32xf32, #tpu.memory_space<vmem>>, vector<64x32xf32>,
    return
  }
  func.func @transform_0(%arg0: i32) -> (i32, i32) {
    %c0_i32 = arith.constant 0 : i32
    %c0_i32_0 = arith.constant 0 : i32
    return %arg0, %c0_i32 : i32, i32
  }
  func.func @transform_1(%arg0: i32) -> (i32, i32) {
    %c0_i32 = arith.constant 0 : i32
    %c0_i32_0 = arith.constant 0 : i32
    %c0_i32_1 = arith.constant 0 : i32
    return %c0_i32, %c0_i32_0 : i32, i32
  }
  func.func @transform_2(%arg0: i32) -> (i32, i32) {
    %c0_i32 = arith.constant 0 : i32
    %c0_i32_0 = arith.constant 0 : i32
    %c0_i32_1 = arith.constant 0 : i32
    return %c0_i32, %c0_i32_0 : i32, i32
  }
  func.func @transform_3(%arg0: i32) -> (i32, i32, i32) {
    %c0_i32 = arith.constant 0 : i32
    %c0_i32_0 = arith.constant 0 : i32
    %c0_i32_1 = arith.constant 0 : i32
    %c0_i32_2 = arith.constant 0 : i32
    return %c0_i32, %c0_i32_0, %c0_i32_1 : i32, i32, i32
  }
  func.func @transform_4(%arg0: i32) -> (i32, i32) {
    %c0_i32 = arith.constant 0 : i32
    %c0_i32_0 = arith.constant 0 : i32
    %c0_i32_1 = arith.constant 0 : i32
    return %c0_i32, %c0_i32_0 : i32, i32
  }
  func.func @transform_5(%arg0: i32) -> (i32, i32) {
    %c0_i32 = arith.constant 0 : i32
    %c0_i32_0 = arith.constant 0 : i32
    %c0_i32_1 = arith.constant 0 : i32
    return %c0_i32, %c0_i32_0 : i32, i32
  }
  func.func @transform_6(%arg0: i32) -> (i32, i32, i32) {
    %c1_i32 = arith.constant 1 : i32
    %c0_i32 = arith.constant 0 : i32
    %0 = arith.cmpi eq, %c1_i32, %c0_i32 : i32
    %c1_i32_0 = arith.constant 1 : i32
    %1 = arith.select %0, %c1_i32_0, %c1_i32 : i32
    %2 = arith.remsi %arg0, %1 : i32
    %c0_i32_1 = arith.constant 0 : i32
    %3 = arith.cmpi ne, %2, %c0_i32_1 : i32
    %c0_i32_2 = arith.constant 0 : i32
    %4 = arith.cmpi slt, %2, %c0_i32_2 : i32
    %c0_i32_3 = arith.constant 0 : i32
    %5 = arith.cmpi slt, %1, %c0_i32_3 : i32
    %6 = arith.xori %4, %5 : i1
    %7 = arith.andi %6, %3 : i1
    %8 = arith.addi %2, %1 : i32
    %9 = arith.select %7, %8, %2 : i32
    %c0_i32_4 = arith.constant 0 : i32
    %c0_i32_5 = arith.constant 0 : i32
    %c0_i32_6 = arith.constant 0 : i32
    return %9, %c0_i32_4, %c0_i32_5 : i32, i32, i32
  }
  func.func @transform_7(%arg0: i32) -> (i32, i32) {
    %c0_i32 = arith.constant 0 : i32
    %c0_i32_0 = arith.constant 0 : i32
    %c0_i32_1 = arith.constant 0 : i32
    return %c0_i32, %c0_i32_0 : i32, i32
  }
  func.func @transform_8(%arg0: i32) -> (i32, i32) {
    %c0_i32 = arith.constant 0 : i32
    %c0_i32_0 = arith.constant 0 : i32
    %c0_i32_1 = arith.constant 0 : i32
    return %c0_i32, %c0_i32_0 : i32, i32
  }
  func.func @transform_9(%arg0: i32) -> (i32, i32) {
    %c0_i32 = arith.constant 0 : i32
    %c0_i32_0 = arith.constant 0 : i32
    return %arg0, %c0_i32 : i32, i32
  }
}

</mosaic_0001>

<bundles_post_ra>
// kernel: tpu_custom_call.1
= control target key start
LH: loop header
LB: loop body
LE: loop exit
PB: predicated region body
PF: predicated region fallthrough
CT: control target
= control target key end

     0   :  { %s3145_s30 = smov 0   ;;  %s3607_s0 = inlined_call_operand.vmem [shape: f32[128,32], index: 0, kind: input, shape index: {}]   ;;  %s3608_s1 = inlined_call_operand.vmem [shape: f32[32,96], index: 1, kind: input, shape index: {}]   ;;  %s3609_s2 = inlined_call_operand.vmem [shape: f32[1,96], index: 2, kind: input, shape index: {}]   ;;  %s3610_s3 = inlined_call_operand.vmem [shape: f32[2,16,16], index: 3, kind: input, shape index: {}]   ;;  %s3611_s4 = inlined_call_operand.vmem [shape: f32[32,32], index: 4, kind: input, shape index: {}]   ;;  %s3612_s5 = inlined_call_operand.vmem [shape: f32[1,32], index: 5, kind: input, shape index: {}]   ;;  %s3613_s6 = inlined_call_operand.vmem [shape: f32[4,16,16], index: 6, kind: input, shape index: {}]   ;;  %s3614_s7 = inlined_call_operand.vmem [shape: f32[1,32], index: 7, kind: input, shape index: {}]   ;;  %s3615_s8 = inlined_call_operand.vmem [shape: f32[1,32], index: 8, kind: input, shape index: {}]   ;;  %s3616_s9 = inlined_call_operand.vmem [shape: f32[128,32], index: 9, kind: output, shape index: {}]  }
   0x1 LB: > { %s2486_s10 = sadd.s32 4294967295, %s3087_s30   ;;  %p2490_p0 = scmp.ge.s32.totalorder %s3087_s30, 1  ;;  %s3087_s30 = sphi %s3145_s30, %s19_s30  }
   0x2   : > { %p288_p1 = scmp.lt.s32.totalorder %s3087_s30, 3 }
   0x4   : > { %p289_p2 = pnand %p2490_p0, %p288_p1 }
   0x5   : > { %s2491_s11 = sshll.u32 (!%p289_p2), %s2486_s10, 3  ;;  %vm344_vm0 = vcmask (!%p289_p2), 261120   ;;  %v480_v56 = vld [vmem:[%s3608_s1] sm:$0xff] (!%p289_p2)  ;;  %v481_v57 = vld [vmem:[%s3608_s1 + $0x8] sm:$0xff] (!%p289_p2)  ;;  %v482_v59 = vld [vmem:[%s3608_s1 + $0x10] sm:$0xff] (!%p289_p2)  ;;  %vm636_vm1 = vcmask (!%p289_p2), 130048  }
   0x6   : > { %292 = sbr.rel (%p289_p2) target bundleno = 2388 (0x954), region = 56  ;;  %p325_p3 = scmp.lt.s32.totalorder (!%p289_p2), %s2491_s11, 15  ;;  %v2807_v58 = vpack.c.bf16 (!%p289_p2), %v481_v57, %v480_v56  ;;  %v483_v60 = vld [vmem:[%s3608_s1 + $0x18] sm:$0xff] (!%p289_p2)  ;;  %vm3292_vm2 = vmpackc.low (!%p289_p2), %vm636_vm1, %vm636_vm1 }
   0x7   : > { %v2811_v61 = vpack.c.bf16 (!%p289_p2), %v483_v60, %v482_v59  ;;  %s3089_s10 = smov (!%p289_p2), 96   ;;  %s3090_s13 = smov (!%p289_p2), 64  }
   0x8   : > { %2808 = vmatprep.subr.bf16.mxu0 (!%p289_p2), %v2807_v58  ;;  %2903 = vmatprep.subr.bf16.mxu1 (!%p289_p2), %v2807_v58  ;;  %s3091_s16 = smov (!%p289_p2), 80   ;;  %s3092_s17 = smov (!%p289_p2), 112  }
   0x9   : > { %2810 = vmatpush3.bf16.msra.mxu0 (!%p289_p2), %v2807_v58  ;;  %2905 = vmatpush3.bf16.msra.mxu1 (!%p289_p2), %v2807_v58  ;;  %s3093_s22 = smov (!%p289_p2), 48  }
   0xa   : > { %2812 = vmatprep.subr.bf16.mxu0 (!%p289_p2), %v2811_v61  ;;  %2904 = vmatprep.subr.bf16.mxu1 (!%p289_p2), %v2811_v61 }
   0xd   : > { %s3620_s11 = smov (!%p325_p3, %s2491_s11), 15  ;;  %2814 = vmatpush3.bf16.msra.mxu0 %v2811_v61  ;;  %2906 = vmatpush3.bf16.msra.mxu1 %v2811_v61 }
   0xe   : > { %s2492_s12 = sshll.u32 %s3620_s11, 3 }
   0xf   : > { %s328_s15 = scalar_lea.vmem %s3607_s0, %s2492_s12  ;;  %s334_s18 = scalar_lea.vmem %s3616_s9, %s2492_s12 }
  0x10   : > { %v336_v0 = vld [vmem:[%s328_s15] sm:$0xff]  ;;  %v338_v1 = vld [vmem:[%s328_s15 + $0x10] sm:$0xff]  ;;  %v337_v2 = vld [vmem:[%s328_s15 + $0x8] sm:$0xff] }
  0x11   : > { %v345_v3 = vsel %vm344_vm0, %v336_v0, 0.0  ;;  %v351_v4 = vsel %vm344_vm0, %v338_v1, 0.0  ;;  %v339_v5 = vld [vmem:[%s328_s15 + $0x18] sm:$0xff]  ;;  %v348_v6 = vsel %vm344_vm0, %v337_v2, 0.0  ;;  %v340_v8 = vld [vmem:[%s328_s15 + $0x20] sm:$0xff]  ;;  %v341_v9 = vld [vmem:[%s328_s15 + $0x28] sm:$0xff] }
  0x12   : > { %346 = vadd.xlane.f32.xlu0 %v345_v3  ;;  %352 = vadd.xlane.f32.xlu1 %v351_v4  ;;  %v354_v7 = vsel %vm344_vm0, %v339_v5, 0.0  ;;  %v357_v10 = vsel %vm344_vm0, %v340_v8, 0.0  ;;  %v360_v11 = vsel %vm344_vm0, %v341_v9, 0.0  ;;  %v342_v12 = vld [vmem:[%s328_s15 + $0x30] sm:$0xff]  ;;  %v343_v13 = vld [vmem:[%s328_s15 + $0x38] sm:$0xff] }
  0x13   : > { %v363_v14 = vsel %vm344_vm0, %v342_v12, 0.0  ;;  %v366_v15 = vsel %vm344_vm0, %v343_v13, 0.0 }
  0x16   : > { %349 = vadd.xlane.f32.xlu0 %v348_v6  ;;  %355 = vadd.xlane.f32.xlu1 %v354_v7 }
  0x1a   : > { %358 = vadd.xlane.f32.xlu0 %v357_v10  ;;  %361 = vadd.xlane.f32.xlu1 %v360_v11 }
  0x1e   : > { %364 = vadd.xlane.f32.xlu0 %v363_v14  ;;  %367 = vadd.xlane.f32.xlu1 %v366_v15 }
  0x9f   : > { %v347_v16 = vpop.xlane.xlu0 %346  ;;  %v353_v17 = vpop.xlane.xlu1 %352 }
  0xa0   : > { %v370_v18 = vmul.f32 0.03125, %v347_v16  ;;  %v372_v19 = vmul.f32 0.03125, %v353_v17 }
  0xa2   : > { %v3169_v20 = vsub.f32 %v336_v0, %v370_v18  ;;  %v3171_v21 = vsub.f32 %v338_v1, %v372_v19 }
  0xa3   : > { %v350_v22 = vpop.xlane.xlu0 %349  ;;  %v356_v23 = vpop.xlane.xlu1 %355 }
  0xa4   : > { %v371_v24 = vmul.f32 0.03125, %v350_v22  ;;  %v373_v25 = vmul.f32 0.03125, %v356_v23  ;;  %v386_v26 = vmul.f32 %v3169_v20, %v3169_v20  ;;  %v388_v27 = vmul.f32 %v3171_v21, %v3171_v21  ;;  %v2495_v22 = vld [vmem:[%s3614_s7] ss:$0 sm:$0xff] }
  0xa6   : > { %v3177_v28 = vsub.f32 %v337_v2, %v371_v24  ;;  %v3179_v29 = vsub.f32 %v339_v5, %v373_v25  ;;  %v394_v30 = vsel %vm344_vm0, %v386_v26, 0.0  ;;  %v400_v33 = vsel %vm344_vm0, %v388_v27, 0.0  ;;  %v2496_v26 = vld [vmem:[%s3615_s8] ss:$0 sm:$0xff] }
  0xa7   : > { %395 = vadd.xlane.f32.xlu0 %v394_v30  ;;  %v359_v31 = vpop.xlane.xlu0 %358  ;;  %v362_v32 = vpop.xlane.xlu1 %361 }
  0xa8   : > { %v374_v34 = vmul.f32 0.03125, %v359_v31  ;;  %v375_v35 = vmul.f32 0.03125, %v362_v32  ;;  %v387_v36 = vmul.f32 %v3177_v28, %v3177_v28  ;;  %v389_v37 = vmul.f32 %v3179_v29, %v3179_v29 }
  0xaa   : > { %v3187_v38 = vsub.f32 %v340_v8, %v374_v34  ;;  %v3189_v39 = vsub.f32 %v341_v9, %v375_v35  ;;  %v397_v40 = vsel %vm344_vm0, %v387_v36, 0.0  ;;  %v403_v43 = vsel %vm344_vm0, %v389_v37, 0.0 }
  0xab   : > { %401 = vadd.xlane.f32.xlu0 %v400_v33  ;;  %398 = vadd.xlane.f32.xlu1 %v397_v40  ;;  %v365_v41 = vpop.xlane.xlu0 %364  ;;  %v368_v42 = vpop.xlane.xlu1 %367 }
  0xac   : > { %v376_v44 = vmul.f32 0.03125, %v365_v41  ;;  %v377_v45 = vmul.f32 0.03125, %v368_v42  ;;  %v390_v46 = vmul.f32 %v3187_v38, %v3187_v38  ;;  %v391_v47 = vmul.f32 %v3189_v39, %v3189_v39 }
  0xae   : > { %v3197_v48 = vsub.f32 %v342_v12, %v376_v44  ;;  %v3199_v49 = vsub.f32 %v343_v13, %v377_v45  ;;  %v406_v50 = vsel %vm344_vm0, %v390_v46, 0.0  ;;  %v409_v51 = vsel %vm344_vm0, %v391_v47, 0.0 }
  0xaf   : > { %404 = vadd.xlane.f32.xlu1 %v403_v43  ;;  %407 = vadd.xlane.f32.xlu0 %v406_v50 }
  0xb0   : > { %v392_v52 = vmul.f32 %v3197_v48, %v3197_v48  ;;  %v393_v53 = vmul.f32 %v3199_v49, %v3199_v49 }
  0xb2   : > { %v412_v54 = vsel %vm344_vm0, %v392_v52, 0.0  ;;  %v415_v55 = vsel %vm344_vm0, %v393_v53, 0.0 }
  0xb3   : > { %410 = vadd.xlane.f32.xlu1 %v409_v51  ;;  %413 = vadd.xlane.f32.xlu0 %v412_v54 }
  0xb7   : > { %416 = vadd.xlane.f32.xlu1 %v415_v55 }
 0x134   : > { %v396_v62 = vpop.xlane.xlu0 %395 }
 0x135   : > { %v418_v63 = vmul.f32 0.03125, %v396_v62 }
 0x137   : > { %v426_v0 = vadd.f32 1e-05, %v418_v63 }
 0x138   : > { %v399_v1 = vpop.xlane.xlu1 %398  ;;  %v402_v2 = vpop.xlane.xlu0 %401 }
 0x139   : > { %3001 = vrsqrt.f32 %v426_v0  ;;  %v419_v3 = vmul.f32 0.03125, %v399_v1  ;;  %v420_v4 = vmul.f32 0.03125, %v402_v2 }
 0x13b   : > { %v427_v5 = vadd.f32 1e-05, %v419_v3  ;;  %v428_v6 = vadd.f32 1e-05, %v420_v4 }
 0x13c   : > { %v405_v7 = vpop.xlane.xlu1 %404  ;;  %v408_v8 = vpop.xlane.xlu0 %407 }
 0x13d   : > { %3003 = vrsqrt.f32 %v427_v5  ;;  %v421_v9 = vmul.f32 0.03125, %v405_v7  ;;  %v422_v10 = vmul.f32 0.03125, %v408_v8 }
 0x13e   : > { %3005 = vrsqrt.f32 %v428_v6 }
 0x13f   : > { %v429_v11 = vadd.f32 1e-05, %v421_v9  ;;  %v430_v12 = vadd.f32 1e-05, %v422_v10 }
 0x140   : > { %v411_v13 = vpop.xlane.xlu1 %410  ;;  %v414_v14 = vpop.xlane.xlu0 %413 }
 0x141   : > { %3007 = vrsqrt.f32 %v429_v11  ;;  %v423_v15 = vmul.f32 0.03125, %v411_v13  ;;  %v424_v16 = vmul.f32 0.03125, %v414_v14 }
 0x142   : > { %3009 = vrsqrt.f32 %v430_v12 }
 0x143   : > { %v3002_v17 = vpop.eup %3001  ;;  %v431_v18 = vadd.f32 1e-05, %v423_v15  ;;  %v432_v19 = vadd.f32 1e-05, %v424_v16  ;;  %v2531_v16 = vld [vmem:[%s3610_s3 + $0x18] sm:$0xff] }
 0x144   : > { %v417_v23 = vpop.xlane.xlu1 %416  ;;  %v442_v24 = vmul.f32 %v3002_v17, %v3169_v20 }
 0x145   : > { %3011 = vrsqrt.f32 %v431_v18  ;;  %v425_v25 = vmul.f32 0.03125, %v417_v23 }
 0x146   : > { %3013 = vrsqrt.f32 %v432_v19  ;;  %v457_v27 = vmul.f32 %v2495_v22, %v442_v24 }
 0x147   : > { %v3004_v30 = vpop.eup %3003  ;;  %v433_v31 = vadd.f32 1e-05, %v425_v25 }
 0x148   : > { %v3006_v32 = vpop.eup %3005  ;;  %v472_v33 = vadd.f32 %v2496_v26, %v457_v27  ;;  %v443_v34 = vmul.f32 %v3004_v30, %v3177_v28 }
 0x149   : > { %3015 = vrsqrt.f32 %v433_v31  ;;  %v444_v35 = vmul.f32 %v3006_v32, %v3171_v21 }
 0x14a   : > { %2663 = vmatprep.mubr.msk.f32.mxu0 %vm344_vm0, %v472_v33  ;;  %v458_v20 = vmul.f32 %v2495_v22, %v443_v34 }
 0x14b   : > { %v3008_v36 = vpop.eup %3007  ;;  %v459_v37 = vmul.f32 %v2495_v22, %v444_v35 }
 0x14c   : > { %v3010_v40 = vpop.eup %3009  ;;  %v473_v41 = vadd.f32 %v2496_v26, %v458_v20  ;;  %v445_v42 = vmul.f32 %v3008_v36, %v3179_v29 }
 0x14d   : > { %v474_v43 = vadd.f32 %v2496_v26, %v459_v37  ;;  %v446_v44 = vmul.f32 %v3010_v40, %v3187_v38 }
 0x14e   : > { %2664 = vmatmul.mubr.msk.f32.vlgmr.msra.gmra.mrb[0].mxu0 %vm344_vm0, %v473_v41  ;;  %v460_v45 = vmul.f32 %v2495_v22, %v445_v42 }
 0x14f   : > { %v3012_v46 = vpop.eup %3011  ;;  %2666 = vmatprep.mubr.msk.f32.mxu0 %vm344_vm0, %v474_v43  ;;  %v461_v28 = vmul.f32 %v2495_v22, %v446_v44 }
 0x150   : > { %v3014_v21 = vpop.eup %3013  ;;  %v475_v47 = vadd.f32 %v2496_v26, %v460_v45  ;;  %v447_v50 = vmul.f32 %v3012_v46, %v3189_v39 }
 0x151   : > { %v476_v51 = vadd.f32 %v2496_v26, %v461_v28  ;;  %v448_v52 = vmul.f32 %v3014_v21, %v3197_v48  ;;  %v2497_v48 = vld [vmem:[%s3609_s2] ss:$0 sm:$0xff] }
 0x152   : > { %2667 = vmatmul.mubr.msk.f32.gmra.mrb[2].mxu0 %vm344_vm0, %v475_v47  ;;  %v462_v29 = vmul.f32 %v2495_v22, %v447_v50 }
 0x153   : > { %v3016_v53 = vpop.eup %3015  ;;  %2669 = vmatprep.mubr.msk.f32.mxu1 %vm344_vm0, %v476_v51  ;;  %v463_v38 = vmul.f32 %v2495_v22, %v448_v52  ;;  %v629_v51 = vld [vmem:[%s3610_s3 + $0x8] sm:$0xff]  ;;  %v628_v52 = vld [vmem:[%s3610_s3] sm:$0xff] }
 0x154   : > { %v477_v54 = vadd.f32 %v2496_v26, %v462_v29  ;;  %v449_v55 = vmul.f32 %v3016_v53, %v3199_v49  ;;  %v3339_v53 = vld [vmem:[%s3613_s6 + $0x8] sm:$0xff] }
 0x155   : > { %v478_v56 = vadd.f32 %v2496_v26, %v463_v38 }
 0x156   : > { %2670 = vmatmul.mubr.msk.f32.vlgmr.msra.gmra.mrb[0].mxu1 %vm344_vm0, %v477_v54  ;;  %v464_v57 = vmul.f32 %v2495_v22, %v449_v55  ;;  %v3344_v55 = vld [vmem:[%s3613_s6] sm:$0xff] }
 0x157   : > { %2672 = vmatprep.mubr.msk.f32.mxu1 %vm344_vm0, %v478_v56 }
 0x158   : > { %v479_v39 = vadd.f32 %v2496_v26, %v464_v57 }
 0x15a   : > { %2673 = vmatmul.mubr.msk.f32.gmra.mrb[2].mxu1 %vm344_vm0, %v479_v39 }
 0x221   : > { %v2665_v58 = vpop.f32.mrb[0].mxu0 }
 0x222   : > { %v3246_v59 = vadd.f32 %v2665_v58, %v2497_v48  ;;  %v581_v60 = vpop.f32.mrb[1].mxu0 }
 0x223   : > { %v3248_v61 = vadd.f32 %v2497_v48, %v581_v60 }
 0x225   : > { %v2668_v49 = vpop.f32.mrb[2].mxu0  ;;  %2679 = vmatprep.mubr.msk.f32.mxu1 %vm636_vm1, %v3248_v61  ;;  %v3254_v62 = vpack.i.bf16 %v3246_v59, %v3248_v61 }
 0x226   : > { %v3256_v63 = vadd.f32 %v2668_v49, %v2497_v48  ;;  %v591_v0 = vpop.f32.mrb[3].mxu0 }
 0x227   : > { %v3258_v1 = vadd.f32 %v2497_v48, %v591_v0  ;;  %2922 = vrot.lane.b32.xlu0 %v3254_v62, %s3089_s10 }
 0x229   : > { %v2671_v2 = vpop.f32.mrb[0].mxu1  ;;  %v3263_v3 = vpack.i.bf16 %v3256_v63, %v3258_v1 }
 0x22a   : > { %v3265_v4 = vadd.f32 %v2671_v2, %v2497_v48  ;;  %v601_v5 = vpop.f32.mrb[1].mxu1  ;;  %v3353_v2 = vld [vmem:[%s3613_s6 + $0x28] sm:$0xff] }
 0x22b   : > { %v3267_v6 = vadd.f32 %v2497_v48, %v601_v5  ;;  %2942 = vrot.lane.b32.xlu0 %v3254_v62, %s3090_s13  ;;  %2927 = vrot.lane.b32.xlu1 %v3263_v3, %s3089_s10 }
 0x22d   : > { %v2674_v7 = vpop.f32.mrb[2].mxu1  ;;  %2693 = vmatprep.mubr.msk.f32.mxu0 %vm636_vm1, %v3267_v6  ;;  %v3275_v8 = vpack.i.bf16 %v3265_v4, %v3267_v6 }
 0x22e   : > { %v3277_v9 = vadd.f32 %v2674_v7, %v2497_v48  ;;  %v611_v10 = vpop.f32.mrb[3].mxu1 }
 0x22f   : > { %v3279_v11 = vadd.f32 %v2497_v48, %v611_v10  ;;  %2932 = vrot.lane.b32.xlu1 %v3275_v8, %s3089_s10  ;;  %v3358_v10 = vld [vmem:[%s3613_s6 + $0x20] sm:$0xff] }
 0x231   : > { %v3284_v12 = vpack.i.bf16 %v3277_v9, %v3279_v11 }
 0x233   : > { %2937 = vrot.lane.b32.xlu1 %v3284_v12, %s3089_s10 }
 0x237   : > { %2947 = vrot.lane.b32.xlu1 %v3275_v8, %s3090_s13 }
 0x23b   : > { %2952 = vrot.lane.b32.xlu1 %v3263_v3, %s3090_s13 }
 0x23f   : > { %2957 = vrot.lane.b32.xlu1 %v3284_v12, %s3090_s13  ;;  %s3094_s13 = smov 16  }
 0x299   : > { %v2923_v13 = vpop.permute.xlu0 %2922 }
 0x29a   : > { %v2925_v14 = vunpack.i.h.bf16 %v2923_v13  ;;  %v2924_v15 = vunpack.i.l.bf16 %v2923_v13 }
 0x29c   : > { %v2815_v17 = vpack.c.bf16 %v2925_v14, %v2924_v15 }
 0x29d   : > { %v2928_v18 = vpop.permute.xlu1 %2927  ;;  %v2943_v24 = vpop.permute.xlu0 %2942 }
 0x29e   : > { %v2930_v19 = vunpack.i.h.bf16 %v2928_v18  ;;  %v2929_v22 = vunpack.i.l.bf16 %v2928_v18  ;;  %2817 = vmatprep.subr.msk.bf16.mxu1 %vm3292_vm2, %v2815_v17  ;;  %v2945_v30 = vunpack.i.h.bf16 %v2943_v24  ;;  %v2944_v31 = vunpack.i.l.bf16 %v2943_v24 }
 0x29f   : > { %2820 = vmatpush3.bf16.xpose.msk.msra.mxu1 %vm3292_vm2, %v2815_v17  ;;  %v3364_v17 = vld [vmem:[%s3613_s6 + $0x18] sm:$0xff] }
 0x2a0   : > { %v2821_v23 = vpack.c.bf16 %v2930_v19, %v2929_v22  ;;  %v2839_v20 = vpack.c.bf16 %v2945_v30, %v2944_v31 }
 0x2a1   : > { %v2933_v25 = vpop.permute.xlu1 %2932 }
 0x2a2   : > { %v2935_v26 = vunpack.i.h.bf16 %v2933_v25  ;;  %v2934_v27 = vunpack.i.l.bf16 %v2933_v25  ;;  %2823 = vmatprep.subr.msk.bf16.mxu1 %vm3292_vm2, %v2821_v23 }
 0x2a4   : > { %v2827_v32 = vpack.c.bf16 %v2935_v26, %v2934_v27  ;;  %v3373_v26 = vld [vmem:[%s3613_s6 + $0x38] sm:$0xff]  ;;  %v3378_v27 = vld [vmem:[%s3613_s6 + $0x10] sm:$0xff] }
 0x2a5   : > { %v2938_v33 = vpop.permute.xlu1 %2937 }
 0x2a6   : > { %v2940_v34 = vunpack.i.h.bf16 %v2938_v33  ;;  %v2939_v35 = vunpack.i.l.bf16 %v2938_v33  ;;  %2680 = vmatmul.mubr.msk.f32.vlgmr.msra.gmra.mrb[4].mxu1 %vm636_vm1, %v3246_v59  ;;  %2829 = vmatprep.subr.msk.bf16.mxu0 %vm3292_vm2, %v2827_v32 }
 0x2a7   : > { %2826 = vmatpush3.bf16.xpose.msk.msra.mxu1 %vm3292_vm2, %v2821_v23  ;;  %2686 = vmatprep.mubr.msk.f32.mxu1 %vm636_vm1, %v3258_v1 }
 0x2a8   : > { %v2833_v36 = vpack.c.bf16 %v2940_v34, %v2939_v35  ;;  %2832 = vmatpush3.bf16.xpose.msk.msra.mxu0 %vm3292_vm2, %v2827_v32 }
 0x2a9   : > { %2840 = vmatprep.subr.bf16.mxu0 %v2839_v20  ;;  %v2948_v37 = vpop.permute.xlu1 %2947 }
 0x2aa   : > { %2835 = vmatprep.subr.msk.bf16.mxu1 %vm3292_vm2, %v2833_v36  ;;  %v2950_v40 = vunpack.i.h.bf16 %v2948_v37  ;;  %v2949_v41 = vunpack.i.l.bf16 %v2948_v37 }
 0x2ac   : > { %v3316_v45 = vpack.c.bf16 %v2950_v40, %v2949_v41 }
 0x2ad   : > { %v2953_v42 = vpop.permute.xlu1 %2952 }
 0x2ae   : > { %v2955_v43 = vunpack.i.h.bf16 %v2953_v42  ;;  %v2954_v44 = vunpack.i.l.bf16 %v2953_v42  ;;  %2687 = vmatmul.mubr.msk.f32.vlgmr.msra.gmra.mrb[6].mxu1 %vm636_vm1, %v3256_v63 }
 0x2af   : > { %2694 = vmatmul.mubr.msk.f32.vlgmr.msra.gmra.mrb[4].mxu0 %vm636_vm1, %v3265_v4  ;;  %2838 = vmatpush3.bf16.xpose.msk.msra.mxu1 %vm3292_vm2, %v2833_v36 }
 0x2b0   : > { %v2843_v46 = vpack.c.bf16 %v2955_v43, %v2954_v44  ;;  %2700 = vmatprep.mubr.msk.f32.mxu1 %vm636_vm1, %v3279_v11  ;;  %2842 = vmatpush3.bf16.msra.mxu0 %v2839_v20  ;;  %v3386_v20 = vld [vmem:[%s3613_s6 + $0x30] sm:$0xff] }
 0x2b1   : > { %2848 = vmatprep.subr.bf16.mxu0 %v3316_v45  ;;  %v2958_v28 = vpop.permute.xlu1 %2957 }
 0x2b2   : > { %v2960_v21 = vunpack.i.h.bf16 %v2958_v28  ;;  %v2959_v47 = vunpack.i.l.bf16 %v2958_v28  ;;  %2844 = vmatprep.subr.bf16.mxu1 %v2843_v46 }
 0x2b4   : > { %v3325_v50 = vpack.c.bf16 %v2960_v21, %v2959_v47 }
 0x2b6   : > { %2701 = vmatmul.mubr.msk.f32.vlgmr.msra.gmra.mrb[8].mxu1 %vm636_vm1, %v3277_v9 }
 0x2b7   : > { %2846 = vmatpush3.bf16.msra.mxu1 %v2843_v46 }
 0x2b8   : > { %2852 = vmatprep.subr.bf16.mxu1 %v3325_v50 }
 0x379   : > { %v2681_v29 = vpop.f32.mrb[4].mxu1 }
 0x37a   : > { %v717_v38 = vadd.f32 %v2681_v29, %v629_v51  ;;  %v711_v54 = vpop.f32.mrb[5].mxu1 }
 0x37b   : > { %v712_v56 = vadd.f32 %v711_v54, %v628_v52 }
 0x37c   : > { %v988_v57 = vadd.f32 %v717_v38, %v3339_v53 }
 0x37d   : > { %v987_v39 = vadd.f32 %v712_v56, %v3344_v55 }
 0x37e   : > { %v998_v48 = vsel %vm636_vm1, %v988_v57, -inf }
 0x37f   : > { %999 = vmax.xlane.f32.xlu1 %v998_v48  ;;  %v995_v58 = vsel %vm636_vm1, %v987_v39, -inf }
 0x380   : > { %996 = vmax.xlane.f32.xlu0 %v995_v58 }
 0x381   : > { %v2688_v60 = vpop.f32.mrb[6].mxu1 }
 0x382   : > { %v2695_v49 = vpop.f32.mrb[4].mxu0  ;;  %v800_v0 = vpop.f32.mrb[7].mxu1  ;;  %v806_v13 = vadd.f32 %v2688_v60, %v629_v51 }
 0x383   : > { %v895_v5 = vadd.f32 %v2695_v49, %v629_v51  ;;  %v889_v7 = vpop.f32.mrb[5].mxu0  ;;  %v801_v22 = vadd.f32 %v800_v0, %v628_v52 }
 0x384   : > { %v890_v14 = vadd.f32 %v889_v7, %v628_v52  ;;  %v990_v24 = vadd.f32 %v806_v13, %v3364_v17 }
 0x385   : > { %v992_v15 = vadd.f32 %v895_v5, %v3353_v2  ;;  %v989_v35 = vadd.f32 %v801_v22, %v3378_v27 }
 0x386   : > { %v991_v18 = vadd.f32 %v890_v14, %v3358_v10  ;;  %v1004_v33 = vsel %vm636_vm1, %v990_v24, -inf }
 0x387   : > { %v1010_v19 = vsel %vm636_vm1, %v992_v15, -inf  ;;  %v1001_v37 = vsel %vm636_vm1, %v989_v35, -inf }
 0x388   : > { %1011 = vmax.xlane.f32.xlu1 %v1010_v19  ;;  %v1007_v23 = vsel %vm636_vm1, %v991_v18, -inf }
 0x389   : > { %1008 = vmax.xlane.f32.xlu0 %v1007_v23  ;;  %v2702_v25 = vpop.f32.mrb[8].mxu1 }
 0x38a   : > { %v984_v30 = vadd.f32 %v2702_v25, %v629_v51  ;;  %v978_v31 = vpop.f32.mrb[9].mxu1 }
 0x38b   : > { %v979_v32 = vadd.f32 %v978_v31, %v628_v52 }
 0x38c   : > { %v994_v34 = vadd.f32 %v984_v30, %v3373_v26 }
 0x38d   : > { %1005 = vmax.xlane.f32.xlu0 %v1004_v33  ;;  %v993_v40 = vadd.f32 %v979_v32, %v3386_v20 }
 0x38e   : > { %v1016_v36 = vsel %vm636_vm1, %v994_v34, -inf }
 0x38f   : > { %1017 = vmax.xlane.f32.xlu1 %v1016_v36  ;;  %v1013_v41 = vsel %vm636_vm1, %v993_v40, -inf }
 0x391   : > { %1002 = vmax.xlane.f32.xlu0 %v1001_v37 }
 0x395   : > { %1014 = vmax.xlane.f32.xlu0 %v1013_v41 }
 0x3a0   : > { %2967 = vrot.lane.b32.xlu1 %v3263_v3, %s3091_s16 }
 0x3ab   : > { %2962 = vrot.lane.b32.xlu0 %v3254_v62, %s3091_s16 }
 0x40c   : > { %v1000_v42 = vpop.xlane.xlu1 %999 }
 0x40d   : > { %v1020_v43 = vsub.f32 %v988_v57, %v1000_v42  ;;  %v997_v44 = vpop.xlane.xlu0 %996 }
 0x40e   : > { %v1019_v46 = vsub.f32 %v987_v39, %v997_v44 }
 0x40f   : > { %v1029_v28 = vmul.f32 1.442695, %v1020_v43 }
 0x410   : > { %v1027_v21 = vmul.f32 1.442695, %v1019_v46 }
 0x411   : > { %3017 = vpow2.f32 %v1029_v28 }
 0x412   : > { %3019 = vpow2.f32 %v1027_v21 }
 0x415   : > { %v1012_v47 = vpop.xlane.xlu1 %1011 }
 0x416   : > { %v1024_v51 = vsub.f32 %v992_v15, %v1012_v47  ;;  %v1009_v52 = vpop.xlane.xlu0 %1008 }
 0x417   : > { %v1023_v29 = vsub.f32 %v991_v18, %v1009_v52 }
 0x418   : > { %v1037_v38 = vmul.f32 1.442695, %v1024_v51 }
 0x419   : > { %v1035_v54 = vmul.f32 1.442695, %v1023_v29 }
 0x41a   : > { %3021 = vpow2.f32 %v1037_v38  ;;  %v1006_v56 = vpop.xlane.xlu0 %1005 }
 0x41b   : > { %v3396_v48 = vpop.eup %3017  ;;  %3023 = vpow2.f32 %v1035_v54  ;;  %v1022_v58 = vsub.f32 %v990_v24, %v1006_v56 }
 0x41c   : > { %v3020_v60 = vpop.eup %3019  ;;  %v1046_v57 = vsel %vm636_vm1, %v3396_v48, 0.0  ;;  %v1018_v25 = vpop.xlane.xlu1 %1017 }
 0x41d   : > { %v1033_v39 = vmul.f32 1.442695, %v1022_v58  ;;  %1047 = vadd.xlane.f32.xlu1 %v1046_v57  ;;  %v1043_v49 = vsel %vm636_vm1, %v3020_v60, 0.0  ;;  %v1026_v30 = vsub.f32 %v994_v34, %v1018_v25 }
 0x41e   : > { %v1003_v0 = vpop.xlane.xlu0 %1002  ;;  %1044 = vadd.xlane.f32.xlu0 %v1043_v49 }
 0x41f   : > { %3025 = vpow2.f32 %v1033_v39  ;;  %v1021_v5 = vsub.f32 %v989_v35, %v1003_v0  ;;  %v1041_v32 = vmul.f32 1.442695, %v1026_v30 }
 0x420   : > { %v2968_v34 = vpop.permute.xlu1 %2967 }
 0x421   : > { %v1031_v7 = vmul.f32 1.442695, %v1021_v5  ;;  %v2970_v57 = vunpack.i.h.bf16 %v2968_v34  ;;  %v2969_v39 = vunpack.i.l.bf16 %v2968_v34 }
 0x422   : > { %v1015_v31 = vpop.xlane.xlu0 %1014 }
 0x423   : > { %3027 = vpow2.f32 %v1031_v7  ;;  %v1025_v33 = vsub.f32 %v993_v40, %v1015_v31  ;;  %v2861_v5 = vpack.c.bf16 %v2970_v57, %v2969_v39 }
 0x424   : > { %v3401_v13 = vpop.eup %3021  ;;  %3029 = vpow2.f32 %v1041_v32 }
 0x425   : > { %v3403_v14 = vpop.eup %3023  ;;  %v1058_v15 = vsel %vm636_vm1, %v3401_v13, 0.0  ;;  %v1039_v35 = vmul.f32 1.442695, %v1025_v33 }
 0x426   : > { %1059 = vadd.xlane.f32.xlu1 %v1058_v15  ;;  %v1055_v18 = vsel %vm636_vm1, %v3403_v14, 0.0  ;;  %v2963_v40 = vpop.permute.xlu0 %2962 }
 0x427   : > { %1056 = vadd.xlane.f32.xlu0 %v1055_v18  ;;  %3031 = vpow2.f32 %v1039_v35  ;;  %v2965_v46 = vunpack.i.h.bf16 %v2963_v40 }
 0x429   : > { %v3409_v19 = vpop.eup %3025 }
 0x42a   : > { %v1052_v22 = vsel %vm636_vm1, %v3409_v19, 0.0 }
 0x42b   : > { %1053 = vadd.xlane.f32.xlu1 %v1052_v22 }
 0x42d   : > { %v3413_v23 = vpop.eup %3027 }
 0x42e   : > { %v1049_v24 = vsel %vm636_vm1, %v3413_v23, 0.0  ;;  %v3420_v36 = vpop.eup %3029 }
 0x42f   : > { %1050 = vadd.xlane.f32.xlu0 %v1049_v24  ;;  %v1064_v37 = vsel %vm636_vm1, %v3420_v36, 0.0 }
 0x431   : > { %v3424_v41 = vpop.eup %3031 }
 0x43c   : > { %1434 = vrot.lane.b32.xlu1 %v3248_v61, %s3092_s17  ;;  %v1061_v61 = vsel %vm636_vm1, %v3424_v41, 0.0 }
 0x445   : > { %2972 = vrot.lane.b32.xlu0 %v3275_v8, %s3091_s16 }
 0x460   : > { %1065 = vadd.xlane.f32.xlu1 %v1064_v37 }
 0x464   : > { %1062 = vadd.xlane.f32.xlu0 %v1061_v61 }
 0x471   : > { %2977 = vrot.lane.b32.xlu1 %v3284_v12, %s3091_s16 }
 0x475   : > { %1527 = vrot.lane.b32.xlu1 %v3256_v63, %s3092_s17 }
 0x479   : > { %1618 = vrot.lane.b32.xlu1 %v3265_v4, %s3092_s17 }
 0x47a   : > { %1436 = vrot.lane.b32.xlu0 %v3246_v59, %s3092_s17 }
 0x47d   : > { %1709 = vrot.lane.b32.xlu1 %v3277_v9, %s3092_s17  ;;  %v2964_v9 = vunpack.i.l.bf16 %v2963_v40 }
 0x47e   : > { %1525 = vrot.lane.b32.xlu0 %v3258_v1, %s3092_s17 }
 0x482   : > { %1616 = vrot.lane.b32.xlu0 %v3267_v6, %s3092_s17 }
 0x486   : > { %1707 = vrot.lane.b32.xlu0 %v3279_v11, %s3092_s17  ;;  %v2855_v11 = vpack.c.bf16 %v2965_v46, %v2964_v9 }
 0x4aa   : > { %v1048_v42 = vpop.xlane.xlu1 %1047 }
 0x4ab   : > { %3033 = vrcp.f32 %v1048_v42  ;;  %v1045_v43 = vpop.xlane.xlu0 %1044 }
 0x4ac   : > { %3035 = vrcp.f32 %v1045_v43  ;;  %v2530_v43 = vld [vmem:[%s3610_s3 + $0x10] sm:$0xff] }
 0x4b3   : > { %v1060_v44 = vpop.xlane.xlu1 %1059 }
 0x4b4   : > { %3037 = vrcp.f32 %v1060_v44  ;;  %v1057_v63 = vpop.xlane.xlu0 %1056 }
 0x4b5   : > { %v3034_v4 = vpop.eup %3033  ;;  %3039 = vrcp.f32 %v1057_v63 }
 0x4b6   : > { %v3036_v59 = vpop.eup %3035  ;;  %v1076_v1 = vmul.f32 %v3034_v4, %v3396_v48 }
 0x4b7   : > { %v1075_v28 = vmul.f32 %v3036_v59, %v3020_v60 }
 0x4b8   : > { %v1054_v6 = vpop.xlane.xlu1 %1053 }
 0x4b9   : > { %2707 = vmatprep.mubr.msk.f32.mxu0 %vm636_vm1, %v1075_v28  ;;  %3041 = vrcp.f32 %v1054_v6 }
 0x4ba   : > { %2708 = vmatmul.mubr.msk.f32.vlgmr.msra.gmra.mrb[6].mxu0 %vm636_vm1, %v1076_v1 }
 0x4bb   : > { %2850 = vmatpush3.bf16.msra.mxu0 %v3316_v45 }
 0x4bc   : > { %v1051_v21 = vpop.xlane.xlu0 %1050  ;;  %2857 = vmatprep.subr.msk.bf16.mxu0 %vm3292_vm2, %v2855_v11  ;;  %v1435_v48 = vpop.permute.xlu1 %1434 }
 0x4bd   : > { %3043 = vrcp.f32 %v1051_v21 }
 0x4be   : > { %v3038_v47 = vpop.eup %3037 }
 0x4bf   : > { %v3040_v51 = vpop.eup %3039  ;;  %v1080_v38 = vmul.f32 %v3038_v47, %v3401_v13 }
 0x4c0   : > { %v2973_v52 = vpop.permute.xlu0 %2972  ;;  %v1079_v29 = vmul.f32 %v3040_v51, %v3403_v14 }
 0x4c1   : > { %v2975_v54 = vunpack.i.h.bf16 %v2973_v52  ;;  %v2974_v56 = vunpack.i.l.bf16 %v2973_v52 }
 0x4c2   : > { %2721 = vmatprep.mubr.msk.f32.mxu0 %vm636_vm1, %v1079_v29 }
 0x4c3   : > { %v2867_v58 = vpack.c.bf16 %v2975_v54, %v2974_v56  ;;  %2722 = vmatmul.mubr.msk.f32.vlgmr.msra.gmra.mrb[8].mxu0 %vm636_vm1, %v1080_v38  ;;  %v3042_v45 = vpop.eup %3041 }
 0x4c4   : > { %2860 = vmatpush3.bf16.xpose.msk.msra.mxu0 %vm3292_vm2, %v2855_v11  ;;  %2735 = vmatprep.mubr.msk.f32.mxu0 %vm636_vm1, %v1435_v48  ;;  %v1078_v0 = vmul.f32 %v3042_v45, %v3409_v19 }
 0x4c5   : > { %2869 = vmatprep.subr.msk.bf16.mxu0 %vm3292_vm2, %v2867_v58 }
 0x4c7   : > { %v3044_v60 = vpop.eup %3043 }
 0x4c8   : > { %v1077_v49 = vmul.f32 %v3044_v60, %v3413_v23 }
 0x4ca   : > { %2714 = vmatprep.mubr.msk.f32.mxu1 %vm636_vm1, %v1077_v49 }
 0x4cb   : > { %2715 = vmatmul.mubr.msk.f32.vlgmr.msra.gmra.mrb[10].mxu1 %vm636_vm1, %v1078_v0 }
 0x4cc   : > { %2854 = vmatpush3.bf16.msra.mxu1 %v3325_v50 }
 0x4cd   : > { %2863 = vmatprep.subr.msk.bf16.mxu1 %vm3292_vm2, %v2861_v5 }
 0x4ed   : > { %v1066_v7 = vpop.xlane.xlu1 %1065 }
 0x4ee   : > { %3045 = vrcp.f32 %v1066_v7 }
 0x4f1   : > { %v1063_v13 = vpop.xlane.xlu0 %1062  ;;  %v2978_v14 = vpop.permute.xlu1 %2977 }
 0x4f2   : > { %3047 = vrcp.f32 %v1063_v13  ;;  %v2980_v24 = vunpack.i.h.bf16 %v2978_v14  ;;  %v2979_v50 = vunpack.i.l.bf16 %v2978_v14 }
 0x4f4   : > { %v2873_v33 = vpack.c.bf16 %v2980_v24, %v2979_v50 }
 0x4f5   : > { %v1437_v15 = vpop.permute.xlu0 %1436  ;;  %v1528_v18 = vpop.permute.xlu1 %1527 }
 0x4f6   : > { %2736 = vmatmul.mubr.msk.f32.vlgmr.msra.gmra.mrb[10].mxu0 %vm636_vm1, %v1437_v15 }
 0x4f7   : > { %2872 = vmatpush3.bf16.xpose.msk.msra.mxu0 %vm3292_vm2, %v2867_v58 }
 0x4f8   : > { %v3046_v22 = vpop.eup %3045 }
 0x4f9   : > { %v1526_v19 = vpop.permute.xlu0 %1525  ;;  %v1082_v31 = vmul.f32 %v3046_v22, %v3420_v36  ;;  %v1619_v32 = vpop.permute.xlu1 %1618 }
 0x4fc   : > { %v3048_v23 = vpop.eup %3047 }
 0x4fd   : > { %v1617_v25 = vpop.permute.xlu0 %1616  ;;  %v1081_v30 = vmul.f32 %v3048_v23, %v3424_v41  ;;  %v1710_v36 = vpop.permute.xlu1 %1709 }
 0x4fe   : > { %2749 = vmatprep.mubr.msk.f32.mxu0 %vm636_vm1, %v1617_v25 }
 0x4ff   : > { %2728 = vmatprep.mubr.msk.f32.mxu1 %vm636_vm1, %v1081_v30  ;;  %2750 = vmatmul.mubr.msk.f32.vlgmr.msra.gmra.mrb[12].mxu0 %vm636_vm1, %v1619_v32 }
 0x500   : > { %2729 = vmatmul.mubr.msk.f32.vlgmr.msra.gmra.mrb[12].mxu1 %vm636_vm1, %v1082_v31 }
 0x501   : > { %2866 = vmatpush3.bf16.xpose.msk.msra.mxu1 %vm3292_vm2, %v2861_v5  ;;  %2742 = vmatprep.mubr.msk.f32.mxu1 %vm636_vm1, %v1526_v19  ;;  %v1708_v35 = vpop.permute.xlu0 %1707 }
 0x502   : > { %2875 = vmatprep.subr.msk.bf16.mxu1 %vm3292_vm2, %v2873_v33 }
 0x508   : > { %2743 = vmatmul.mubr.msk.f32.vlgmr.msra.gmra.mrb[14].mxu1 %vm636_vm1, %v1528_v18 }
 0x509   : > { %2878 = vmatpush3.bf16.xpose.msk.msra.mxu1 %vm3292_vm2, %v2873_v33  ;;  %2756 = vmatprep.mubr.msk.f32.mxu1 %vm636_vm1, %v1708_v35 }
 0x510   : > { %2757 = vmatmul.mubr.msk.f32.vlgmr.msra.gmra.mrb[16].mxu1 %vm636_vm1, %v1710_v36 }
 0x58d   : > { %v3478_v37 = vpop.f32.mrb[6].mxu0 }
 0x58e   : > { %v3480_v41 = vpop.f32.mrb[7].mxu0 }
 0x596   : > { %v3482_v61 = vpop.f32.mrb[8].mxu0 }
 0x597   : > { %v3484_v34 = vpop.f32.mrb[9].mxu0 }
 0x59e   : > { %v3486_v40 = vpop.f32.mrb[10].mxu1 }
 0x59f   : > { %v3488_v42 = vpop.f32.mrb[11].mxu1 }
 0x5c9   : > { %v2737_v44 = vpop.f32.mrb[10].mxu0 }
 0x5ca   : > { %v1522_v63 = vadd.f32 %v2737_v44, %v2531_v16  ;;  %v1516_v4 = vpop.f32.mrb[11].mxu0 }
 0x5cb   : > { %v1517_v59 = vadd.f32 %v2530_v43, %v1516_v4 }
 0x5cc   : > { %v1799_v46 = vadd.f32 %v1522_v63, %v3339_v53 }
 0x5cd   : > { %v1798_v9 = vadd.f32 %v1517_v59, %v3344_v55 }
 0x5ce   : > { %v1809_v28 = vsel %vm636_vm1, %v1799_v46, -inf }
 0x5cf   : > { %1810 = vmax.xlane.f32.xlu1 %v1809_v28  ;;  %v1806_v1 = vsel %vm636_vm1, %v1798_v9, -inf }
 0x5d0   : > { %1807 = vmax.xlane.f32.xlu0 %v1806_v1 }
 0x5d2   : > { %v2751_v6 = vpop.f32.mrb[12].mxu0 }
 0x5d3   : > { %v1704_v11 = vadd.f32 %v2751_v6, %v2531_v16  ;;  %v3500_v21 = vpop.f32.mrb[12].mxu1  ;;  %v1698_v47 = vpop.f32.mrb[13].mxu0 }
 0x5d4   : > { %v3502_v51 = vpop.f32.mrb[13].mxu1  ;;  %v1699_v48 = vadd.f32 %v2530_v43, %v1698_v47 }
 0x5d5   : > { %v1803_v52 = vadd.f32 %v1704_v11, %v3353_v2 }
 0x5d6   : > { %v1802_v49 = vadd.f32 %v1699_v48, %v3358_v10 }
 0x5d7   : > { %v1821_v29 = vsel %vm636_vm1, %v1803_v52, -inf }
 0x5d8   : > { %1822 = vmax.xlane.f32.xlu1 %v1821_v29 }
 0x5db   : > { %v2744_v53 = vpop.f32.mrb[14].mxu1 }
 0x5dc   : > { %v1613_v55 = vadd.f32 %v2744_v53, %v2531_v16  ;;  %v1607_v38 = vpop.f32.mrb[15].mxu1 }
 0x5dd   : > { %v1608_v54 = vadd.f32 %v2530_v43, %v1607_v38 }
 0x5de   : > { %v1801_v56 = vadd.f32 %v1613_v55, %v3364_v17  ;;  %v1818_v17 = vsel %vm636_vm1, %v1802_v49, -inf }
 0x5df   : > { %v1800_v45 = vadd.f32 %v1608_v54, %v3378_v27 }
 0x5e0   : > { %v1815_v58 = vsel %vm636_vm1, %v1801_v56, -inf }
 0x5e1   : > { %1816 = vmax.xlane.f32.xlu0 %v1815_v58  ;;  %v1812_v2 = vsel %vm636_vm1, %v1800_v45, -inf }
 0x5e3   : > { %v2758_v60 = vpop.f32.mrb[16].mxu1 }
 0x5e4   : > { %v1795_v57 = vadd.f32 %v2758_v60, %v2531_v16  ;;  %v1789_v39 = vpop.f32.mrb[17].mxu1 }
 0x5e5   : > { %v1790_v0 = vadd.f32 %v2530_v43, %v1789_v39  ;;  %1813 = vmax.xlane.f32.xlu0 %v1812_v2 }
 0x5e6   : > { %v1805_v5 = vadd.f32 %v1795_v57, %v3373_v26 }
 0x5e7   : > { %v1804_v13 = vadd.f32 %v1790_v0, %v3386_v20 }
 0x5e8   : > { %v1827_v7 = vsel %vm636_vm1, %v1805_v5, -inf }
 0x5e9   : > { %1828 = vmax.xlane.f32.xlu1 %v1827_v7  ;;  %1819 = vmax.xlane.f32.xlu0 %v1818_v17  ;;  %v1824_v27 = vsel %vm636_vm1, %v1804_v13, -inf }
 0x5ed   : > { %1825 = vmax.xlane.f32.xlu0 %v1824_v27 }
 0x65c   : > { %v1811_v14 = vpop.xlane.xlu1 %1810 }
 0x65d   : > { %v1831_v15 = vsub.f32 %v1799_v46, %v1811_v14  ;;  %v1808_v18 = vpop.xlane.xlu0 %1807 }
 0x65e   : > { %v1830_v19 = vsub.f32 %v1798_v9, %v1808_v18 }
 0x65f   : > { %v1840_v10 = vmul.f32 1.442695, %v1831_v15 }
 0x660   : > { %v1838_v22 = vmul.f32 1.442695, %v1830_v19 }
 0x661   : > { %3049 = vpow2.f32 %v1840_v10 }
 0x662   : > { %3051 = vpow2.f32 %v1838_v22 }
 0x665   : > { %v1823_v26 = vpop.xlane.xlu1 %1822 }
 0x666   : > { %v1835_v50 = vsub.f32 %v1803_v52, %v1823_v26 }
 0x668   : > { %v1848_v32 = vmul.f32 1.442695, %v1835_v50 }
 0x66b   : > { %v3516_v23 = vpop.eup %3049 }
 0x66c   : > { %v3052_v24 = vpop.eup %3051  ;;  %v1857_v20 = vsel %vm636_vm1, %v3516_v23, 0.0 }
 0x66d   : > { %1858 = vadd.xlane.f32.xlu1 %v1857_v20  ;;  %v1854_v25 = vsel %vm636_vm1, %v3052_v24, 0.0 }
 0x66e   : > { %v1817_v30 = vpop.xlane.xlu0 %1816  ;;  %1855 = vadd.xlane.f32.xlu0 %v1854_v25 }
 0x66f   : > { %v1833_v31 = vsub.f32 %v1801_v56, %v1817_v30 }
 0x671   : > { %v1844_v33 = vmul.f32 1.442695, %v1833_v31 }
 0x672   : > { %v1814_v35 = vpop.xlane.xlu0 %1813 }
 0x673   : > { %3053 = vpow2.f32 %v1844_v33  ;;  %v1832_v36 = vsub.f32 %v1800_v45, %v1814_v35 }
 0x674   : > { %3055 = vpow2.f32 %v1848_v32 }
 0x675   : > { %v1842_v16 = vmul.f32 1.442695, %v1832_v36 }
 0x676   : > { %v1829_v43 = vpop.xlane.xlu1 %1828  ;;  %v1820_v44 = vpop.xlane.xlu0 %1819 }
 0x677   : > { %3057 = vpow2.f32 %v1842_v16  ;;  %v1837_v63 = vsub.f32 %v1805_v5, %v1829_v43  ;;  %v1834_v4 = vsub.f32 %v1802_v49, %v1820_v44 }
 0x679   : > { %v1852_v59 = vmul.f32 1.442695, %v1837_v63  ;;  %v1846_v46 = vmul.f32 1.442695, %v1834_v4 }
 0x67a   : > { %v1826_v9 = vpop.xlane.xlu0 %1825 }
 0x67b   : > { %3059 = vpow2.f32 %v1852_v59  ;;  %v1836_v28 = vsub.f32 %v1804_v13, %v1826_v9  ;;  %v2283_v9 = vld [vmem:[%s3611_s4 + $0x8] sm:$0xff] }
 0x67c   : > { %3061 = vpow2.f32 %v1846_v46 }
 0x67d   : > { %v3054_v1 = vpop.eup %3053  ;;  %v1850_v6 = vmul.f32 1.442695, %v1836_v28  ;;  %v2284_v28 = vld [vmem:[%s3611_s4 + $0x10] sm:$0xff] }
 0x67e   : > { %v1863_v11 = vsel %vm636_vm1, %v3054_v1, 0.0  ;;  %v3522_v47 = vpop.eup %3055 }
 0x67f   : > { %3063 = vpow2.f32 %v1850_v6  ;;  %1864 = vadd.xlane.f32.xlu1 %v1863_v11  ;;  %v1869_v29 = vsel %vm636_vm1, %v3522_v47, 0.0  ;;  %v2285_v6 = vld [vmem:[%s3611_s4 + $0x18] sm:$0xff] }
 0x680   : > { %v2899_v11 = vpack.c.bf16 %v2285_v6, %v2284_v28 }
 0x681   : > { %v3058_v52 = vpop.eup %3057 }
 0x682   : > { %v1860_v53 = vsel %vm636_vm1, %v3058_v52, 0.0 }
 0x683   : > { %1870 = vadd.xlane.f32.xlu1 %v1869_v29  ;;  %1861 = vadd.xlane.f32.xlu0 %v1860_v53 }
 0x685   : > { %v3527_v55 = vpop.eup %3059 }
 0x686   : > { %v3529_v38 = vpop.eup %3061  ;;  %v1875_v54 = vsel %vm636_vm1, %v3527_v55, 0.0 }
 0x687   : > { %1876 = vadd.xlane.f32.xlu1 %v1875_v54  ;;  %v1866_v56 = vsel %vm636_vm1, %v3529_v38, 0.0 }
 0x688   : > { %1867 = vadd.xlane.f32.xlu0 %v1866_v56 }
 0x689   : > { %v3064_v48 = vpop.eup %3063 }
 0x68a   : > { %v1872_v58 = vsel %vm636_vm1, %v3064_v48, 0.0 }
 0x68c   : > { %1873 = vadd.xlane.f32.xlu0 %v1872_v58 }
 0x698   : > { %2987 = vrot.lane.b32.xlu1 %v3263_v3, %s3093_s22 }
 0x69c   : > { %2992 = vrot.lane.b32.xlu1 %v3275_v8, %s3093_s22 }
 0x6a0   : > { %2997 = vrot.lane.b32.xlu1 %v3284_v12, %s3093_s22 }
 0x6a2   : > { %2982 = vrot.lane.b32.xlu0 %v3254_v62, %s3093_s22 }
 0x6fa   : > { %v1859_v39 = vpop.xlane.xlu1 %1858 }
 0x6fb   : > { %v1856_v45 = vpop.xlane.xlu0 %1855 }
 0x6fc   : > { %3065 = vrcp.f32 %v1856_v45 }
 0x706   : > { %v3066_v60 = vpop.eup %3065 }
 0x707   : > { %v1886_v57 = vmul.f32 %v3066_v60, %v3052_v24 }
 0x709   : > { %2763 = vmatprep.mubr.msk.f32.mxu0 %vm636_vm1, %v1886_v57 }
 0x70c   : > { %v1865_v2 = vpop.xlane.xlu1 %1864 }
 0x70d   : > { %3067 = vrcp.f32 %v1865_v2 }
 0x710   : > { %v1871_v49 = vpop.xlane.xlu1 %1870  ;;  %v1862_v0 = vpop.xlane.xlu0 %1861 }
 0x711   : > { %3069 = vrcp.f32 %v1862_v0 }
 0x712   : > { %3071 = vrcp.f32 %v1859_v39 }
 0x714   : > { %v1877_v5 = vpop.xlane.xlu1 %1876 }
 0x715   : > { %v1868_v3 = vpop.xlane.xlu0 %1867 }
 0x716   : > { %3073 = vrcp.f32 %v1868_v3 }
 0x717   : > { %3075 = vrcp.f32 %v1877_v5  ;;  %v3068_v17 = vpop.eup %3067 }
 0x718   : > { %v2988_v8 = vpop.permute.xlu1 %2987  ;;  %v1889_v24 = vmul.f32 %v3068_v17, %v3054_v1 }
 0x719   : > { %v2990_v12 = vunpack.i.h.bf16 %v2988_v8  ;;  %v2989_v62 = vunpack.i.l.bf16 %v2988_v8  ;;  %v1874_v7 = vpop.xlane.xlu0 %1873 }
 0x71a   : > { %3077 = vrcp.f32 %v1874_v7 }
 0x71b   : > { %3079 = vrcp.f32 %v1871_v49  ;;  %v2883_v13 = vpack.c.bf16 %v2990_v12, %v2989_v62  ;;  %v3070_v27 = vpop.eup %3069 }
 0x71c   : > { %v2993_v14 = vpop.permute.xlu1 %2992  ;;  %v1888_v18 = vmul.f32 %v3070_v27, %v3058_v52  ;;  %v3072_v25 = vpop.eup %3071 }
 0x71d   : > { %v2983_v15 = vpop.permute.xlu0 %2982  ;;  %2884 = vmatprep.subr.bf16.mxu1 %v2883_v13  ;;  %v2995_v19 = vunpack.i.h.bf16 %v2993_v14  ;;  %v2994_v10 = vunpack.i.l.bf16 %v2993_v14  ;;  %v1887_v43 = vmul.f32 %v3072_v25, %v3516_v23  ;;  %v2282_v23 = vld [vmem:[%s3611_s4] sm:$0xff] }
 0x71e   : > { %v2985_v22 = vunpack.i.h.bf16 %v2983_v15  ;;  %v2984_v26 = vunpack.i.l.bf16 %v2983_v15  ;;  %2886 = vmatpush3.bf16.msra.mxu1 %v2883_v13  ;;  %2770 = vmatprep.mubr.msk.f32.mxu1 %vm636_vm1, %v1888_v18  ;;  %v2895_v1 = vpack.c.bf16 %v2283_v9, %v2282_v23 }
 0x71f   : > { %v2887_v33 = vpack.c.bf16 %v2995_v19, %v2994_v10 }
 0x720   : > { %v2879_v20 = vpack.c.bf16 %v2985_v22, %v2984_v26  ;;  %v2998_v50 = vpop.permute.xlu1 %2997  ;;  %v3074_v32 = vpop.eup %3073 }
 0x721   : > { %v3000_v30 = vunpack.i.h.bf16 %v2998_v50  ;;  %v2999_v31 = vunpack.i.l.bf16 %v2998_v50  ;;  %2771 = vmatmul.mubr.msk.f32.vlgmr.msra.gmra.mrb[18].mxu1 %vm636_vm1, %v1889_v24  ;;  %v3076_v35 = vpop.eup %3075  ;;  %v1890_v63 = vmul.f32 %v3074_v32, %v3529_v38 }
 0x722   : > { %2880 = vmatprep.subr.bf16.mxu0 %v2879_v20  ;;  %v1893_v59 = vmul.f32 %v3076_v35, %v3527_v55 }
 0x723   : > { %v2891_v36 = vpack.c.bf16 %v3000_v30, %v2999_v31  ;;  %2882 = vmatpush3.bf16.msra.mxu0 %v2879_v20 }
 0x724   : > { %v3078_v16 = vpop.eup %3077  ;;  %2888 = vmatprep.subr.bf16.mxu0 %v2887_v33 }
 0x725   : > { %v3080_v44 = vpop.eup %3079  ;;  %2892 = vmatprep.subr.bf16.mxu1 %v2891_v36  ;;  %v1892_v4 = vmul.f32 %v3078_v16, %v3064_v48 }
 0x726   : > { %2764 = vmatmul.mubr.msk.f32.vlgmr.msra.gmra.mrb[14].mxu0 %vm636_vm1, %v1887_v43  ;;  %2894 = vmatpush3.bf16.msra.mxu1 %v2891_v36  ;;  %v1891_v46 = vmul.f32 %v3080_v44, %v3522_v47 }
 0x727   : > { %2890 = vmatpush3.bf16.msra.mxu0 %v2887_v33  ;;  %2777 = vmatprep.mubr.msk.f32.mxu0 %vm636_vm1, %v1890_v63 }
 0x728   : > { %2784 = vmatprep.mubr.msk.f32.mxu1 %vm636_vm1, %v1892_v4  ;;  %2896 = vmatprep.subr.bf16.mxu0 %v2895_v1 }
 0x729   : > { %2785 = vmatmul.mubr.msk.f32.vlgmr.msra.gmra.mrb[20].mxu1 %vm636_vm1, %v1893_v59 }
 0x72a   : > { %2778 = vmatmul.mubr.msk.f32.vlgmr.msra.gmra.mrb[16].mxu0 %vm636_vm1, %v1891_v46 }
 0x72b   : > { %2898 = vmatpush3.bf16.msra.mxu0 %v2895_v1 }
 0x72c   : > { %2900 = vmatprep.subr.bf16.mxu0 %v2899_v11 }
 0x72f   : > { %2902 = vmatpush3.bf16.msra.mxu0 %v2899_v11 }
 0x7f4   : > { %v2772_v47 = vpop.f32.mrb[18].mxu1 }
 0x7f5   : > { %v2059_v52 = vpop.f32.mrb[19].mxu1 }
 0x7f9   : > { %v2765_v29 = vpop.f32.mrb[14].mxu0 }
 0x7fa   : > { %2252 = vrot.lane.b32.xlu1 %v2765_v29, %s3094_s13  ;;  %v1972_v53 = vpop.f32.mrb[15].mxu0 }
 0x7fb   : > { %2250 = vrot.lane.b32.xlu0 %v1972_v53, %s3094_s13 }
 0x7fc   : > { %v2786_v55 = vpop.f32.mrb[20].mxu1 }
 0x7fd   : > { %v2779_v38 = vpop.f32.mrb[16].mxu0  ;;  %v2233_v54 = vpop.f32.mrb[21].mxu1 }
 0x7fe   : > { %2256 = vrot.lane.b32.xlu1 %v2772_v47, %s3094_s13  ;;  %v2146_v56 = vpop.f32.mrb[17].mxu0 }
 0x7ff   : > { %2254 = vrot.lane.b32.xlu0 %v2059_v52, %s3094_s13 }
 0x802   : > { %2260 = vrot.lane.b32.xlu1 %v2779_v38, %s3094_s13 }
 0x803   : > { %2258 = vrot.lane.b32.xlu0 %v2146_v56, %s3094_s13 }
 0x806   : > { %2264 = vrot.lane.b32.xlu1 %v2786_v55, %s3094_s13 }
 0x807   : > { %2262 = vrot.lane.b32.xlu0 %v2233_v54, %s3094_s13 }
 0x86c   : > { %v2253_v48 = vpop.permute.xlu1 %2252 }
 0x86d   : > { %v2251_v58 = vpop.permute.xlu0 %2250  ;;  %v2275_v60 = vsel %vm636_vm1, %v3478_v37, %v2253_v48 }
 0x86e   : > { %v2274_v45 = vsel %vm636_vm1, %v3480_v41, %v2251_v58 }
 0x86f   : > { %2795 = vmatprep.mubr.msk.f32.mxu0 %vm344_vm0, %v2274_v45 }
 0x870   : > { %v2257_v57 = vpop.permute.xlu1 %2256  ;;  %2796 = vmatmul.mubr.msk.f32.vlgmr.msra.gmra.mrb[18].mxu0 %vm344_vm0, %v2275_v60 }
 0x871   : > { %v2255_v39 = vpop.permute.xlu0 %2254  ;;  %v2277_v49 = vsel %vm636_vm1, %v3486_v40, %v2257_v57 }
 0x872   : > { %v2276_v2 = vsel %vm636_vm1, %v3488_v42, %v2255_v39 }
 0x873   : > { %2798 = vmatprep.mubr.msk.f32.mxu0 %vm344_vm0, %v2276_v2 }
 0x874   : > { %2799 = vmatmul.mubr.msk.f32.gmra.mrb[20].mxu0 %vm344_vm0, %v2277_v49  ;;  %v2261_v41 = vpop.permute.xlu1 %2260 }
 0x875   : > { %v2259_v0 = vpop.permute.xlu0 %2258  ;;  %v2279_v5 = vsel %vm636_vm1, %v3482_v61, %v2261_v41  ;;  %v2556_v61 = vld [vmem:[%s3612_s5] ss:$0 sm:$0xff] }
 0x876   : > { %v2278_v37 = vsel %vm636_vm1, %v3484_v34, %v2259_v0 }
 0x877   : > { %2801 = vmatprep.mubr.msk.f32.mxu0 %vm344_vm0, %v2278_v37 }
 0x878   : > { %v2265_v3 = vpop.permute.xlu1 %2264  ;;  %2802 = vmatmul.mubr.msk.f32.gmra.mrb[22].mxu0 %vm344_vm0, %v2279_v5 }
 0x879   : > { %v2263_v42 = vpop.permute.xlu0 %2262  ;;  %v2281_v8 = vsel %vm636_vm1, %v3500_v21, %v2265_v3 }
 0x87a   : > { %v2280_v40 = vsel %vm636_vm1, %v3502_v51, %v2263_v42 }
 0x87b   : > { %2804 = vmatprep.mubr.msk.f32.mxu0 %vm344_vm0, %v2280_v40 }
 0x87c   : > { %2805 = vmatmul.mubr.msk.f32.gmra.mrb[24].mxu0 %vm344_vm0, %v2281_v8 }
 0x943   : > { %v2797_v34 = vpop.f32.mrb[18].mxu0 }
 0x944   : > { %v2389_v12 = vadd.f32 %v2797_v34, %v2556_v61  ;;  %v2383_v62 = vpop.f32.mrb[19].mxu0 }
 0x945   : > { %v2384_v51 = vadd.f32 %v2556_v61, %v2383_v62 }
 0x946   : > { %2423 = vst.msk [vmem:[%s334_s18 + $0x8] sm:$0xff] %vm344_vm0, %v2389_v12 }
 0x947   : > { %2422 = vst.msk [vmem:[%s334_s18] sm:$0xff] %vm344_vm0, %v2384_v51  ;;  %v2800_v21 = vpop.f32.mrb[20].mxu0 }
 0x948   : > { %v2399_v7 = vadd.f32 %v2800_v21, %v2556_v61  ;;  %v2393_v17 = vpop.f32.mrb[21].mxu0 }
 0x949   : > { %v2394_v13 = vadd.f32 %v2556_v61, %v2393_v17 }
 0x94a   : > { %2425 = vst.msk [vmem:[%s334_s18 + $0x18] sm:$0xff] %vm344_vm0, %v2399_v7 }
 0x94b   : > { %2424 = vst.msk [vmem:[%s334_s18 + $0x10] sm:$0xff] %vm344_vm0, %v2394_v13  ;;  %v2803_v27 = vpop.f32.mrb[22].mxu0 }
 0x94c   : > { %v2409_v14 = vadd.f32 %v2803_v27, %v2556_v61  ;;  %v2403_v15 = vpop.f32.mrb[23].mxu0 }
 0x94d   : > { %v2404_v18 = vadd.f32 %v2556_v61, %v2403_v15 }
 0x94e   : > { %2427 = vst.msk [vmem:[%s334_s18 + $0x28] sm:$0xff] %vm344_vm0, %v2409_v14 }
 0x94f   : > { %2426 = vst.msk [vmem:[%s334_s18 + $0x20] sm:$0xff] %vm344_vm0, %v2404_v18  ;;  %v2806_v19 = vpop.f32.mrb[24].mxu0 }
 0x950   : > { %v2419_v10 = vadd.f32 %v2806_v19, %v2556_v61  ;;  %v2413_v22 = vpop.f32.mrb[25].mxu0 }
 0x951   : > { %v2414_v26 = vadd.f32 %v2556_v61, %v2413_v22 }
 0x952   : > { %2429 = vst.msk [vmem:[%s334_s18 + $0x38] sm:$0xff] %vm344_vm0, %v2419_v10 }
 0x953   : > { %2428 = vst.msk [vmem:[%s334_s18 + $0x30] sm:$0xff] %vm344_vm0, %v2414_v26 }
 0x954 PF: > { %s19_s30 = sadd.s32 1, %s3087_s30  }
 0x955   : > { %p16_p4 = scmp.ge.s32.totalorder %s19_s30, 4  }
 0x957   :  { %18 = sbr.rel (!%p16_p4) target bundleno = 1 (0x1), region = 87 }

</bundles_post_ra>
